<compile_context>
chip_gen: v5e
topology: v5e:2x2
jax: 0.10.0
libtpu: 0.0.40
codegen_flags: <defaults>
</compile_context>

<pallas_src>
import functools
import math

import jax
import jax.numpy as jnp
from jax.experimental import pallas as pl
from jax.experimental.pallas import tpu as pltpu


_VMEM_LIMIT = 40 * 1024 * 1024        # scoped VMEM cap (< 64 MiB v7x physical)
_CONV_VMEM_BUDGET = 22 * 1024 * 1024  # target per-step working set for convs


# ----------------------------------------------------------------------------
# helpers
# ----------------------------------------------------------------------------
def _round_up(n, m):
    return (n + m - 1) // m * m


def _tile(n, align, cap):
    """(padded_size, tile): tile <= cap, multiple of `align`; the dimension is
    padded up to a multiple of the tile (no divisor hunting)."""
    p = _round_up(n, align)
    if p <= cap:
        return p, p
    t = (cap // align) * align
    return _round_up(n, t), t


def _chan_tile(c, cap=512):
    """Channel tile: multiple of 128 dividing c, else the full dimension."""
    if c % 128 != 0:
        return c
    t = min(c, cap)
    while c % t != 0:
        t -= 128
    return max(t, 128)


def _row_tile(m, c, itemsize, target_bytes=6 << 20, cap=8192):
    """Row-block size for (rows, C) elementwise / reduction kernels."""
    t = max(8, min(cap, (target_bytes // max(1, c * itemsize)) // 8 * 8))
    mp = _round_up(m, 8)
    return mp if mp <= t else t


# ----------------------------------------------------------------------------
# Fused matmul kernel: y = relu?((A @ B) * scale + bias [+ residual])
#   A, B, residual: bf16 (MXU-native); accumulation + epilogue in f32.
#   Used for all 1x1 convolutions and the single stride-2 3x3 im2col conv.
# ----------------------------------------------------------------------------
def _mm_kernel(a_ref, b_ref, s_ref, t_ref, *refs, relu, has_res):
    if has_res:
        r_ref, o_ref, acc_ref = refs
    else:
        o_ref, acc_ref = refs

    @pl.when(pl.program_id(2) == 0)
    def _():
        acc_ref[...] = jnp.zeros_like(acc_ref)

    acc_ref[...] += jnp.dot(a_ref[...], b_ref[...],
                            preferred_element_type=jnp.float32)

    @pl.when(pl.program_id(2) == pl.num_programs(2) - 1)
    def _():
        y = acc_ref[...] * s_ref[...] + t_ref[...]
        if has_res:
            y = y + r_ref[...].astype(jnp.float32)
        if relu:
            y = jnp.maximum(y, 0.0)
        o_ref[...] = y.astype(o_ref.dtype)


def matmul_fused(a, b, scale=None, bias=None, relu=False, residual=None,
                 out_dtype=jnp.bfloat16):
    M, K = a.shape
    K2, N = b.shape
    assert K == K2
    if scale is None:
        scale = jnp.ones((N,), jnp.float32)
    if bias is None:
        bias = jnp.zeros((N,), jnp.float32)
    a = a.astype(jnp.bfloat16)
    b = b.astype(jnp.bfloat16)
    Mp, tm = _tile(M, 16, 1024)    # bf16 packs 16 sublanes / vreg
    Kp, tk = _tile(K, 128, 512)
    Np, tn = _tile(N, 128, 1024)
    if (Mp, Kp) != (M, K):
        a = jnp.pad(a, ((0, Mp - M), (0, Kp - K)))
    if (Kp, Np) != (K, N):
        b = jnp.pad(b, ((0, Kp - K), (0, Np - N)))
    s_p = jnp.pad(scale.astype(jnp.float32), (0, Np - N)).reshape(1, Np)
    t_p = jnp.pad(bias.astype(jnp.float32), (0, Np - N)).reshape(1, Np)
    args = [a, b, s_p, t_p]
    in_specs = [
        pl.BlockSpec((tm, tk), lambda i, j, k: (i, k)),
        pl.BlockSpec((tk, tn), lambda i, j, k: (k, j)),
        pl.BlockSpec((1, tn), lambda i, j, k: (0, j)),
        pl.BlockSpec((1, tn), lambda i, j, k: (0, j)),
    ]
    has_res = residual is not None
    if has_res:
        r = residual.astype(jnp.bfloat16)
        if (Mp, Np) != (M, N):
            r = jnp.pad(r, ((0, Mp - M), (0, Np - N)))
        args.append(r)
        in_specs.append(pl.BlockSpec((tm, tn), lambda i, j, k: (i, j)))
    grid = (Mp // tm, Np // tn, Kp // tk)
    out = pl.pallas_call(
        functools.partial(_mm_kernel, relu=relu, has_res=has_res),
        out_shape=jax.ShapeDtypeStruct((Mp, Np), out_dtype),
        grid_spec=pltpu.PrefetchScalarGridSpec(
            num_scalar_prefetch=0,
            grid=grid,
            in_specs=in_specs,
            out_specs=pl.BlockSpec((tm, tn), lambda i, j, k: (i, j)),
            scratch_shapes=[pltpu.VMEM((tm, tn), jnp.float32)],
        ),
        compiler_params=pltpu.CompilerParams(
            dimension_semantics=("parallel", "parallel", "arbitrary"),
            vmem_limit_bytes=_VMEM_LIMIT),
    )(*args)
    if (Mp, Np) != (M, N):
        out = out[:M, :N]
    return out


# ----------------------------------------------------------------------------
# Direct 3x3 (dilated) stride-1 convolution: tap-accumulating MXU kernel.
# Grid (n, cout_j, row_group, cin_k); the 9 taps are unrolled inside the body.
# H taps come from three H-shifted copies of the zero-padded post-activation
# map (padding the *activated* tensor keeps PyTorch zero-pad semantics);
# W taps are static sublane slices of the full-width row strip.
# ----------------------------------------------------------------------------
def _conv3x3_kernel(x0, x1, x2, w_ref, s_ref, t_ref, *refs,
                    relu, has_res, dil):
    if has_res:
        r_ref, o_ref, acc_ref = refs
    else:
        o_ref, acc_ref = refs
    k = pl.program_id(3)
    th = o_ref.shape[1]
    wo = o_ref.shape[2]

    @pl.when(k == 0)
    def _():
        acc_ref[...] = jnp.zeros_like(acc_ref)

    def row_body(h, carry):
        part = None
        for dy, xr in enumerate((x0, x1, x2)):
            row = xr[0, h]                              # (Wp, cin_t) bf16
            for dx in range(3):
                a = row[dx * dil: dx * dil + wo, :]
                contrib = jnp.dot(a, w_ref[dy, dx],
                                  preferred_element_type=jnp.float32)
                part = contrib if part is None else part + contrib
        acc_ref[h] = acc_ref[h] + part
        return carry

    jax.lax.fori_loop(0, th, row_body, 0)

    @pl.when(k == pl.num_programs(3) - 1)
    def _():
        y = acc_ref[...] * s_ref[...] + t_ref[...]
        if has_res:
            y = y + r_ref[0].astype(jnp.float32)
        if relu:
            y = jnp.maximum(y, 0.0)
        o_ref[0] = y.astype(o_ref.dtype)


def conv3x3_direct(x, w, dilation=1, padding=1, scale=None, bias=None,
                   relu=False, residual=None, out_dtype=jnp.bfloat16):
    """3x3 stride-1 conv (optionally dilated) with fused folded-BN / ReLU /
    residual add.  x: NHWC (post-activation, zero-padded here); w: (9*Cin,
    Cout) with (ky, kx, Cin) ordering."""
    N, H, W, Cin = x.shape
    Cout = w.shape[1]
    d = dilation
    p = padding
    Ho = H + 2 * p - 2 * d
    Wo = W + 2 * p - 2 * d
    Wp = W + 2 * p
    cin_t = _chan_tile(Cin)
    cout_t = _chan_tile(Cout)
    has_res = residual is not None

    # row-group per grid step (amortizes weight re-fetch), bounded by VMEM
    th = max(1, min(16, 1024 // max(1, Wo), Ho))

    def vmem_bytes(th_):
        act = 3 * 2 * th_ * Wp * cin_t * 2
        wgt = 2 * 9 * cin_t * cout_t * 2
        acc = th_ * Wo * cout_t * 4
        out = 2 * th_ * Wo * cout_t * 2
        res = out if has_res else 0
        return act + wgt + acc + out + res

    while th > 1 and vmem_bytes(th) > _CONV_VMEM_BUDGET:
        th = max(1, th // 2)

    Hop = _round_up(Ho, th)
    x = x.astype(jnp.bfloat16)
    xp = jnp.pad(x, ((0, 0), (p, p + Hop - Ho), (p, p), (0, 0)))
    xs = [xp[:, dy * d: dy * d + Hop] for dy in range(3)]
    w4 = w.astype(jnp.bfloat16).reshape(3, 3, Cin, Cout)
    if scale is None:
        scale = jnp.ones((Cout,), jnp.float32)
    if bias is None:
        bias = jnp.zeros((Cout,), jnp.float32)
    s3 = scale.astype(jnp.float32).reshape(1, 1, Cout)
    t3 = bias.astype(jnp.float32).reshape(1, 1, Cout)

    x_spec = pl.BlockSpec((1, th, Wp, cin_t), lambda n, j, i, k: (n, i, 0, k))
    in_specs = [x_spec, x_spec, x_spec,
                pl.BlockSpec((3, 3, cin_t, cout_t),
                             lambda n, j, i, k: (0, 0, k, j)),
                pl.BlockSpec((1, 1, cout_t), lambda n, j, i, k: (0, 0, j)),
                pl.BlockSpec((1, 1, cout_t), lambda n, j, i, k: (0, 0, j))]
    args = xs + [w4, s3, t3]
    if has_res:
        r = residual.astype(jnp.bfloat16)
        if Hop != Ho:
            r = jnp.pad(r, ((0, 0), (0, Hop - Ho), (0, 0), (0, 0)))
        args.append(r)
        in_specs.append(pl.BlockSpec((1, th, Wo, cout_t),
                                     lambda n, j, i, k: (n, i, 0, j)))

    grid = (N, Cout // cout_t, Hop // th, Cin // cin_t)
    out = pl.pallas_call(
        functools.partial(_conv3x3_kernel, relu=relu, has_res=has_res, dil=d),
        out_shape=jax.ShapeDtypeStruct((N, Hop, Wo, Cout), out_dtype),
        grid_spec=pltpu.PrefetchScalarGridSpec(
            num_scalar_prefetch=0,
            grid=grid,
            in_specs=in_specs,
            out_specs=pl.BlockSpec((1, th, Wo, cout_t),
                                   lambda n, j, i, k: (n, i, 0, j)),
            scratch_shapes=[pltpu.VMEM((th, Wo, cout_t), jnp.float32)],
        ),
        compiler_params=pltpu.CompilerParams(
            dimension_semantics=("parallel", "parallel", "parallel",
                                 "arbitrary"),
            vmem_limit_bytes=_VMEM_LIMIT),
    )(*args)
    if Hop != Ho:
        out = out[:, :Ho]
    return out


# ----------------------------------------------------------------------------
# Tiled elementwise BN(eval, folded) + ReLU
# ----------------------------------------------------------------------------
def _bnrelu_kernel(x_ref, s_ref, t_ref, o_ref):
    y = x_ref[...].astype(jnp.float32) * s_ref[...] + t_ref[...]
    o_ref[...] = jnp.maximum(y, 0.0).astype(o_ref.dtype)


def bnrelu(x, scale, shift):
    N, H, W, C = x.shape
    M = N * H * W
    xm = x.reshape(M, C)
    tr = _row_tile(M, C, x.dtype.itemsize)
    Mp = _round_up(M, tr)
    if Mp != M:
        xm = jnp.pad(xm, ((0, Mp - M), (0, 0)))
    out = pl.pallas_call(
        _bnrelu_kernel,
        out_shape=jax.ShapeDtypeStruct((Mp, C), x.dtype),
        grid=(Mp // tr,),
        in_specs=[pl.BlockSpec((tr, C), lambda i: (i, 0)),
                  pl.BlockSpec((1, C), lambda i: (0, 0)),
                  pl.BlockSpec((1, C), lambda i: (0, 0))],
        out_specs=pl.BlockSpec((tr, C), lambda i: (i, 0)),
        compiler_params=pltpu.CompilerParams(
            dimension_semantics=("parallel",)),
    )(xm, scale.reshape(1, C).astype(jnp.float32),
      shift.reshape(1, C).astype(jnp.float32))
    if Mp != M:
        out = out[:M]
    return out.reshape(N, H, W, C)


# ----------------------------------------------------------------------------
# MaxPool2d(kernel_size=3, stride=2, padding=1), row-tiled.
# TODO(synk): even/odd W split is still done once in XLA (one extra pass over
# the padded map); in-kernel strided de-interleave would remove it.
# ----------------------------------------------------------------------------
def _maxpool_kernel(ev0, ev1, ev2, od0, od1, od2, o_ref):
    re = jnp.maximum(jnp.maximum(ev0[0, 0], ev1[0, 0]), ev2[0, 0])
    ro = jnp.maximum(jnp.maximum(od0[0, 0], od1[0, 0]), od2[0, 0])
    wo = o_ref.shape[2]
    o_ref[0, 0] = jnp.maximum(jnp.maximum(re[:wo], ro[:wo]), re[1:wo + 1])


def maxpool_3x3_s2_p1(x):
    N, H, W, C = x.shape
    Ho = (H - 1) // 2 + 1
    Wo = (W - 1) // 2 + 1
    wr = 2 * Wo + 1 - W            # right pad so padded width = 2*Wo + 2 (even)
    xp = jnp.pad(x, ((0, 0), (1, 1), (1, wr), (0, 0)),
                 constant_values=-jnp.inf)
    xe = xp[:, :, 0::2, :]         # even padded columns  (N, H+2, Wo+1, C)
    xo = xp[:, :, 1::2, :]         # odd  padded columns  (N, H+2, Wo+1, C)
    We = Wo + 1

    def row_spec(dy):
        return pl.BlockSpec((1, 1, We, C),
                            lambda n, oh, dy=dy: (n, 2 * oh + dy, 0, 0))

    return pl.pallas_call(
        _maxpool_kernel,
        out_shape=jax.ShapeDtypeStruct((N, Ho, Wo, C), x.dtype),
        grid=(N, Ho),
        in_specs=[row_spec(0), row_spec(1), row_spec(2),
                  row_spec(0), row_spec(1), row_spec(2)],
        out_specs=pl.BlockSpec((1, 1, Wo, C), lambda n, oh: (n, oh, 0, 0)),
        compiler_params=pltpu.CompilerParams(
            dimension_semantics=("parallel", "parallel")),
    )(xe, xe, xe, xo, xo, xo)


# ----------------------------------------------------------------------------
# Global average pool (AdaptiveAvgPool2d(1)), tiled with a resident f32 acc.
# ----------------------------------------------------------------------------
def _gap_kernel(x_ref, o_ref, acc_ref, *, inv):
    @pl.when(pl.program_id(1) == 0)
    def _():
        acc_ref[...] = jnp.zeros_like(acc_ref)

    acc_ref[...] += jnp.sum(x_ref[0].astype(jnp.float32), axis=0, keepdims=True)

    @pl.when(pl.program_id(1) == pl.num_programs(1) - 1)
    def _():
        o_ref[0] = (acc_ref[...] * inv).astype(o_ref.dtype)


def global_avg_pool(x):
    N, H, W, C = x.shape
    HW = H * W
    xm = x.reshape(N, HW, C)
    tr = _row_tile(HW, C, x.dtype.itemsize)
    HWp = _round_up(HW, tr)
    if HWp != HW:
        xm = jnp.pad(xm, ((0, 0), (0, HWp - HW), (0, 0)))
    out = pl.pallas_call(
        functools.partial(_gap_kernel, inv=1.0 / HW),
        out_shape=jax.ShapeDtypeStruct((N, 1, C), jnp.float32),
        grid=(N, HWp // tr),
        in_specs=[pl.BlockSpec((1, tr, C), lambda n, b: (n, b, 0))],
        out_specs=pl.BlockSpec((1, 1, C), lambda n, b: (n, 0, 0)),
        scratch_shapes=[pltpu.VMEM((1, C), jnp.float32)],
        compiler_params=pltpu.CompilerParams(
            dimension_semantics=("parallel", "arbitrary")),
    )(xm)
    return out.reshape(N, 1, 1, C).astype(x.dtype)


# ----------------------------------------------------------------------------
# im2col (only for the single stride-2 3x3 conv and all 1x1 convs)
# ----------------------------------------------------------------------------
def _im2col(x, ksize, stride, dilation, padding):
    N, H, W, C = x.shape
    if ksize == 1:
        cols = x[:, ::stride, ::stride, :]
        _, Ho, Wo, _ = cols.shape
        return cols.reshape(N * Ho * Wo, C), (N, Ho, Wo)
    xp = jnp.pad(x, ((0, 0), (padding, padding), (padding, padding), (0, 0)))
    Hp, Wp = H + 2 * padding, W + 2 * padding
    eff = dilation * (ksize - 1) + 1
    Ho = (Hp - eff) // stride + 1
    Wo = (Wp - eff) // stride + 1
    taps = []
    for dy in range(ksize):
        for dx in range(ksize):
            ys, xs = dy * dilation, dx * dilation
            taps.append(xp[:, ys:ys + (Ho - 1) * stride + 1:stride,
                           xs:xs + (Wo - 1) * stride + 1:stride, :])
    cols = jnp.concatenate(taps, axis=-1)
    return cols.reshape(N * Ho * Wo, ksize * ksize * C), (N, Ho, Wo)


def conv2d(x, w, ksize, stride=1, dilation=1, padding=0,
           scale=None, bias=None, relu=False, residual=None,
           out_dtype=jnp.bfloat16):
    """Bias-free Conv2d with optional fused folded-BN / ReLU / residual add."""
    if ksize == 3 and stride == 1:
        return conv3x3_direct(x, w, dilation=dilation, padding=padding,
                              scale=scale, bias=bias, relu=relu,
                              residual=residual, out_dtype=out_dtype)
    # TODO(synk): the lone stride-2 3x3 conv (mod4 block 0) still uses im2col.
    cols, (N, Ho, Wo) = _im2col(x, ksize, stride, dilation, padding)
    res = residual.reshape(N * Ho * Wo, -1) if residual is not None else None
    y = matmul_fused(cols, w, scale=scale, bias=bias, relu=relu,
                     residual=res, out_dtype=out_dtype)
    return y.reshape(N, Ho, Wo, w.shape[1])


# ----------------------------------------------------------------------------
# Bilinear upsampling (align_corners=True) on NHWC (C stays the lane dim).
# Used for the 256-channel decoder upsample; ASPP image branch is a broadcast.
# ----------------------------------------------------------------------------
def _interp_matrix(out_size, in_size):
    if in_size == 1:
        return jnp.ones((out_size, 1), jnp.float32)
    src = jnp.arange(out_size, dtype=jnp.float32) * ((in_size - 1) / (out_size - 1))
    lo = jnp.clip(jnp.floor(src), 0, in_size - 2).astype(jnp.int32)
    frac = src - lo.astype(jnp.float32)
    return ((1.0 - frac)[:, None] * jax.nn.one_hot(lo, in_size, dtype=jnp.float32)
            + frac[:, None] * jax.nn.one_hot(lo + 1, in_size, dtype=jnp.float32))


def _upsample_kernel(lo_ref, hi_ref, rw_ref, xlo_ref, xhi_ref, o_ref, *, ratio):
    oh = pl.program_id(1)
    f = oh.astype(jnp.float32) * ratio - lo_ref[oh].astype(jnp.float32)
    xl = xlo_ref[0, 0].astype(jnp.float32)
    xh = xhi_ref[0, 0].astype(jnp.float32)
    row = (xl + f * (xh - xl)).astype(jnp.bfloat16)          # (Wi, C)
    out = jnp.dot(rw_ref[...], row, preferred_element_type=jnp.float32)
    o_ref[0, 0] = out.astype(o_ref.dtype)


def upsample_bilinear_align_corners(x, out_h, out_w):
    N, Hi, Wi, C = x.shape
    if Hi == out_h and Wi == out_w:
        return x
    if Hi == 1 and Wi == 1:
        # 1x1 source (ASPP image-pool branch): bilinear == broadcast.
        return jnp.broadcast_to(x, (N, out_h, out_w, C))
    if out_h == 1 or Hi == 1:
        ratio = 0.0
        src = jnp.zeros((out_h,), jnp.float32)
    else:
        ratio = (Hi - 1) / (out_h - 1)
        src = jnp.arange(out_h, dtype=jnp.float32) * ratio
    lo = jnp.clip(jnp.floor(src), 0, max(Hi - 2, 0)).astype(jnp.int32)
    hi = jnp.minimum(lo + 1, Hi - 1).astype(jnp.int32)
    rw = _interp_matrix(out_w, Wi).astype(jnp.bfloat16)
    return pl.pallas_call(
        functools.partial(_upsample_kernel, ratio=ratio),
        out_shape=jax.ShapeDtypeStruct((N, out_h, out_w, C), x.dtype),
        grid_spec=pltpu.PrefetchScalarGridSpec(
            num_scalar_prefetch=2,
            grid=(N, out_h),
            in_specs=[
                pl.BlockSpec((out_w, Wi), lambda n, oh, lo, hi: (0, 0)),
                pl.BlockSpec((1, 1, Wi, C),
                             lambda n, oh, lo, hi: (n, lo[oh], 0, 0)),
                pl.BlockSpec((1, 1, Wi, C),
                             lambda n, oh, lo, hi: (n, hi[oh], 0, 0)),
            ],
            out_specs=pl.BlockSpec((1, 1, out_w, C),
                                   lambda n, oh, lo, hi: (n, oh, 0, 0)),
        ),
        compiler_params=pltpu.CompilerParams(
            dimension_semantics=("parallel", "parallel")),
    )(lo, hi, rw, x, x)


# ----------------------------------------------------------------------------
# Final classifier upsample: NCHW, lane-dense (out_w on lanes), f32 exact.
# Per grid step (n, c, row-group): gather+lerp the two source rows for each of
# `toh` output rows into a VMEM scratch, then one (toh, Wi) @ (Wi, out_w)
# MXU matmul does the W interpolation.  Output is emitted NCHW directly.
# ----------------------------------------------------------------------------
def _upfinal_kernel(x_ref, rwt_ref, o_ref, tmp_ref, *, toh, hi_num, den, lo_max):
    i = pl.program_id(2)

    def body(t, carry):
        oh = i * toh + t
        num = oh * hi_num
        lo = jnp.minimum(num // den, lo_max)
        f = (num - lo * den).astype(jnp.float32) * (1.0 / float(den))
        rows = x_ref[0, 0, pl.ds(lo, 2), :]                  # (2, Wi) f32
        tmp_ref[pl.ds(t, 1), :] = rows[0:1] * (1.0 - f) + rows[1:2] * f
        return carry

    jax.lax.fori_loop(0, toh, body, 0, unroll=8)
    o_ref[0, 0] = jnp.dot(tmp_ref[...], rwt_ref[...],
                          preferred_element_type=jnp.float32)


def upsample_final_nchw(x, out_h, out_w):
    """align_corners=True bilinear on NCHW f32 (used only for the logits)."""
    N, C, Hi, Wi = x.shape
    x = x.astype(jnp.float32)
    if (Hi, Wi) == (out_h, out_w):
        return x
    rwt = jnp.transpose(_interp_matrix(out_w, Wi).astype(jnp.float32))  # (Wi, out_w)
    toh = out_h if out_h <= 64 else 64
    toh = _round_up(toh, 8)
    out_hp = _round_up(out_h, toh)
    den = max(out_h - 1, 1)
    out = pl.pallas_call(
        functools.partial(_upfinal_kernel, toh=toh, hi_num=Hi - 1, den=den,
                          lo_max=max(Hi - 2, 0)),
        out_shape=jax.ShapeDtypeStruct((N, C, out_hp, out_w), jnp.float32),
        grid=(N, C, out_hp // toh),
        in_specs=[pl.BlockSpec((1, 1, Hi, Wi), lambda n, c, i: (n, c, 0, 0)),
                  pl.BlockSpec((Wi, out_w), lambda n, c, i: (0, 0))],
        out_specs=pl.BlockSpec((1, 1, toh, out_w), lambda n, c, i: (n, c, i, 0)),
        scratch_shapes=[pltpu.VMEM((toh, Wi), jnp.float32)],
        compiler_params=pltpu.CompilerParams(
            dimension_semantics=("parallel", "parallel", "parallel"),
            vmem_limit_bytes=_VMEM_LIMIT),
    )(x, rwt)
    if out_hp != out_h:
        out = out[:, :, :out_h, :]
    return out


# ----------------------------------------------------------------------------
# Deterministic parameter construction (synthetic weights, no checkpoint)
# ----------------------------------------------------------------------------
class _ParamGen:
    def __init__(self, key):
        self._key = key

    def _next(self):
        self._key, k = jax.random.split(self._key)
        return k

    def conv(self, cin, cout, ksize):
        fan_in = cin * ksize * ksize
        w = jax.random.normal(self._next(), (ksize * ksize * cin, cout),
                              jnp.float32)
        return (w * math.sqrt(2.0 / fan_in)).astype(jnp.bfloat16)

    def bn(self, c):
        # BatchNorm (eval) folded to per-channel scale/shift (kept in f32).
        eps = 1e-5
        gamma = 1.0 + 0.05 * jax.random.normal(self._next(), (c,), jnp.float32)
        beta = 0.05 * jax.random.normal(self._next(), (c,), jnp.float32)
        mean = 0.05 * jax.random.normal(self._next(), (c,), jnp.float32)
        var = 1.0 + 0.05 * jax.random.uniform(self._next(), (c,), jnp.float32)
        scale = gamma / jnp.sqrt(var + eps)
        shift = beta - mean * scale
        return scale, shift


def _make_block(pg, cin, channels, stride, dilation):
    """IdentityResidualBlock parameters (pre-activation wide-resnet block)."""
    is_bottleneck = len(channels) == 3
    need_proj = (stride != 1) or (cin != channels[-1])
    p = {"meta": (is_bottleneck, need_proj, stride, dilation),
         "bn1": pg.bn(cin)}
    if is_bottleneck:
        p["w1"] = pg.conv(cin, channels[0], 1)
        p["bn2"] = pg.bn(channels[0])
        p["w2"] = pg.conv(channels[0], channels[1], 3)
        p["bn3"] = pg.bn(channels[1])
        p["w3"] = pg.conv(channels[1], channels[2], 1)
    else:
        p["w1"] = pg.conv(cin, channels[0], 3)
        p["bn2"] = pg.bn(channels[0])
        p["w2"] = pg.conv(channels[0], channels[1], 3)
    if need_proj:
        p["wproj"] = pg.conv(cin, channels[-1], 1)
    return p


def _block_forward(x, p):
    is_bottleneck, need_proj, stride, dil = p["meta"]
    a = bnrelu(x, *p["bn1"])                                   # bn1 + act
    shortcut = conv2d(a, p["wproj"], 1, stride=stride) if need_proj else x
    if is_bottleneck:
        h = conv2d(a, p["w1"], 1, stride=stride,
                   scale=p["bn2"][0], bias=p["bn2"][1], relu=True)
        h = conv2d(h, p["w2"], 3, dilation=dil, padding=dil,
                   scale=p["bn3"][0], bias=p["bn3"][1], relu=True)
        # TODO(synk): Dropout2d (mod6 p=0.3 / mod7 p=0.5) is identity at inference.
        out = conv2d(h, p["w3"], 1, residual=shortcut)         # out.add_(shortcut)
    else:
        h = conv2d(a, p["w1"], 3, stride=stride, dilation=dil, padding=dil,
                   scale=p["bn2"][0], bias=p["bn2"][1], relu=True)
        out = conv2d(h, p["w2"], 3, dilation=dil, padding=dil,
                     residual=shortcut)
    return out


def make_deepwv3plus_params(key, num_classes):
    pg = _ParamGen(key)
    params = {}
    # WiderResNet38-A2 trunk (dilation=True), structure [3, 3, 6, 3, 1, 1]
    params["mod1_w"] = pg.conv(3, 64, 3)
    structure = [3, 3, 6, 3, 1, 1]
    channels = [(128, 128), (256, 256), (512, 512), (512, 1024),
                (512, 1024, 2048), (1024, 2048, 4096)]
    in_c = 64
    for mod_id, num in enumerate(structure):
        blocks = []
        for block_id in range(num):
            if mod_id == 3:
                dil = 2
            elif mod_id > 3:
                dil = 4
            else:
                dil = 1
            stride = 2 if (block_id == 0 and mod_id == 2) else 1
            blocks.append(_make_block(pg, in_c, channels[mod_id], stride, dil))
            in_c = channels[mod_id][-1]
        params["mod%d" % (mod_id + 2)] = blocks
    # ASPP: output_stride=8 -> rates [12, 24, 36]; 4096 -> 256 per branch.
    rates = [12, 24, 36]
    params["aspp"] = {
        "rates": rates,
        "img_w": pg.conv(4096, 256, 1), "img_bn": pg.bn(256),
        "b0_w": pg.conv(4096, 256, 1), "b0_bn": pg.bn(256),
        "br_w": [pg.conv(4096, 256, 3) for _ in rates],
        "br_bn": [pg.bn(256) for _ in rates],
    }
    params["bot_fine_w"] = pg.conv(128, 48, 1)
    params["bot_aspp_w"] = pg.conv(1280, 256, 1)
    params["final_w1"] = pg.conv(256 + 48, 256, 3)
    params["final_bn1"] = pg.bn(256)
    params["final_w2"] = pg.conv(256, 256, 3)
    params["final_bn2"] = pg.bn(256)
    params["final_w3"] = pg.conv(256, num_classes, 1)
    return params


# ----------------------------------------------------------------------------
# Forward pass (inference path of DeepWV3Plus.forward)
# ----------------------------------------------------------------------------
def deepwv3plus_forward(params, inp):
    # layout: `inp` is NCHW (PyTorch); internal NHWC bf16; output NCHW f32.
    x = jnp.transpose(inp, (0, 2, 3, 1)).astype(jnp.bfloat16)
    N, H, W, _ = x.shape

    x = conv2d(x, params["mod1_w"], 3, padding=1)              # mod1
    x = maxpool_3x3_s2_p1(x)                                   # pool2
    for bp in params["mod2"]:                                  # mod2
        x = _block_forward(x, bp)
    m2 = x
    x = maxpool_3x3_s2_p1(m2)                                  # pool3
    for mod in ("mod3", "mod4", "mod5", "mod6", "mod7"):       # mod3..mod7
        for bp in params[mod]:
            x = _block_forward(x, bp)

    # ASPP
    asp = params["aspp"]
    _, Hf, Wf, _ = x.shape
    img = global_avg_pool(x)
    img = conv2d(img, asp["img_w"], 1, scale=asp["img_bn"][0],
                 bias=asp["img_bn"][1], relu=True)
    img = upsample_bilinear_align_corners(img, Hf, Wf)
    outs = [img,
            conv2d(x, asp["b0_w"], 1, scale=asp["b0_bn"][0],
                   bias=asp["b0_bn"][1], relu=True)]
    for w, bn, r in zip(asp["br_w"], asp["br_bn"], asp["rates"]):
        outs.append(conv2d(x, w, 3, dilation=r, padding=r,
                           scale=bn[0], bias=bn[1], relu=True))
    x = jnp.concatenate(outs, axis=-1)                         # 1280 channels

    dec0_up = conv2d(x, params["bot_aspp_w"], 1)               # 1280 -> 256
    dec0_fine = conv2d(m2, params["bot_fine_w"], 1)            # 128 -> 48
    dec0_up = upsample_bilinear_align_corners(dec0_up, m2.shape[1], m2.shape[2])
    dec0 = jnp.concatenate([dec0_fine, dec0_up], axis=-1)      # 48 + 256 = 304

    d = conv2d(dec0, params["final_w1"], 3, padding=1,
               scale=params["final_bn1"][0], bias=params["final_bn1"][1],
               relu=True)
    d = conv2d(d, params["final_w2"], 3, padding=1,
               scale=params["final_bn2"][0], bias=params["final_bn2"][1],
               relu=True)
    d = conv2d(d, params["final_w3"], 1, out_dtype=jnp.float32)  # -> classes
    # final bilinear upsample: NCHW, lane-dense, f32 (no trailing transpose)
    d = jnp.transpose(d, (0, 3, 1, 2))                          # small tensor
    out = upsample_final_nchw(d, H, W)
    # TODO(synk): training branch (self.criterion(out, gts)) is not implemented;
    # this reproduces the inference return value.
    return out


if __name__ == "__main__":
    num_classes = 19
    key = jax.random.PRNGKey(0)
    k_inp, k_par = jax.random.split(key)
    inp = jax.random.normal(k_inp, (1, 3, 32, 32), jnp.float32)
    params = make_deepwv3plus_params(k_par, num_classes)
    out = deepwv3plus_forward(params, inp)
    out = jax.block_until_ready(out)
    assert out.shape == (1, num_classes, 32, 32), out.shape
    assert bool(jnp.all(jnp.isfinite(out)))
    print("KERNEL_OK")
</pallas_src>

<mosaic_0001>
module attributes {stable_mosaic.version = 11 : i64} {
  func.func @_conv3x3_kernel(%arg0: i32, %arg1: i32, %arg2: i32, %arg3: i32, %arg4: memref<1x16x34x3xbf16, #tpu.memory_space<vmem>>, %arg5: memref<1x16x34x3xbf16, #tpu.memory_space<vmem>>, %arg6: memref<1x16x34x3xbf16, #tpu.memory_space<vmem>>, %arg7: memref<3x3x3x64xbf16, #tpu.memory_space<vmem>>, %arg8: memref<1x1x64xf32, #tpu.memory_space<vmem>>, %arg9: memref<1x1x64xf32, #tpu.memory_space<vmem>>, %arg10: memref<1x16x32x64xbf16, #tpu.memory_space<vmem>>, %arg11: memref<16x32x64xf32, #tpu.memory_space<vmem>>) attributes {dimension_semantics = [#tpu.dimension_semantics<parallel>, #tpu.dimension_semantics<parallel>, #tpu.dimension_semantics<parallel>, #tpu.dimension_semantics<arbitrary>], iteration_bounds = array<i64: 1, 1, 2, 1>, scalar_prefetch = 0 : i64, scratch_operands = 1 : i64, tpu.core_type = #tpu.core_type<tc>, window_params = [{transform_indices = @transform_0, window_bounds = array<i64: 1, 16, 34, 3>}, {transform_indices = @transform_1, window_bounds = array<i64: 1, 16, 34, 3>}, {transform_indices = @transform_2, window_bounds = array<i64: 1, 16, 34, 3>}, {transform_indices = @transform_3, window_bounds = array<i64: 3, 3, 3, 64>}, {transform_indices = @transform_4, window_bounds = array<i64: 1, 1, 64>}, {transform_indices = @transform_5, window_bounds = array<i64: 1, 1, 64>}, {transform_indices = @transform_6, window_bounds = array<i64: 1, 16, 32, 64>}]} {
    %c0_i32 = arith.constant 0 : i32
    %0 = arith.cmpi eq, %arg3, %c0_i32 : i32
    %1 = arith.extui %0 : i1 to i32
    %c0_i32_0 = arith.constant 0 : i32
    %2 = arith.cmpi ne, %1, %c0_i32_0 : i32
    scf.if %2 {
      %cst = arith.constant 0.000000e+00 : f32
      %7 = vector.broadcast %cst : f32 to vector<16x32x64xf32>
      %c0 = arith.constant 0 : index
      %c0_5 = arith.constant 0 : index
      %c0_6 = arith.constant 0 : index
      %8 = vector.load %arg11[%c0, %c0_5, %c0_6] : memref<16x32x64xf32, #tpu.memory_space<vmem>>, vector<16x32x64xf32>
      tpu.vector_store %arg11[%c0, %c0_5, %c0_6], %7 {strides = array<i32>} : memref<16x32x64xf32, #tpu.memory_space<vmem>>, vector<16x32x64xf32>,
    } else {
    }
    %c0_i32_1 = arith.constant 0 : i32
    %c16_i32 = arith.constant 16 : i32
    %3 = arith.addi %c0_i32_1, %c16_i32 : i32
    %c1_i32 = arith.constant 1 : i32
    scf.for %arg12 = %c0_i32_1 to %3 step %c1_i32  : i32 {
      %c0 = arith.constant 0 : index
      %7 = arith.index_cast %arg12 : i32 to index
      %c0_5 = arith.constant 0 : index
      %c0_6 = arith.constant 0 : index
      %8 = vector.load %arg4[%c0, %7, %c0_5, %c0_6] : memref<1x16x34x3xbf16, #tpu.memory_space<vmem>>, vector<1x1x34x3xbf16>
      %9 = vector.shape_cast %8 : vector<1x1x34x3xbf16> to vector<34x3xbf16>
      %10 = vector.extract_strided_slice %9 {offsets = [0, 0], sizes = [32, 3], strides = [1, 1]} : vector<34x3xbf16> to vector<32x3xbf16>
      %c0_7 = arith.constant 0 : index
      %c0_8 = arith.constant 0 : index
      %c0_9 = arith.constant 0 : index
      %c0_10 = arith.constant 0 : index
      %11 = vector.load %arg7[%c0_7, %c0_8, %c0_9, %c0_10] : memref<3x3x3x64xbf16, #tpu.memory_space<vmem>>, vector<1x1x3x64xbf16>
      %12 = vector.shape_cast %11 : vector<1x1x3x64xbf16> to vector<3x64xbf16>
      %cst = arith.constant dense<0.000000e+00> : vector<32x64xf32>
      %13 = tpu.matmul %10, %12, %cst {dimension_numbers = #tpu.dot_dimension_numbers<[1], [0], [0], [1], [0, 0, 1, 1], [], []>} : vector<32x3xbf16>, vector<3x64xbf16>, vector<32x64xf32> -> vector<32x64xf32>
      %14 = vector.extract_strided_slice %9 {offsets = [1, 0], sizes = [32, 3], strides = [1, 1]} : vector<34x3xbf16> to vector<32x3xbf16>
      %c0_11 = arith.constant 0 : index
      %c1 = arith.constant 1 : index
      %c0_12 = arith.constant 0 : index
      %c0_13 = arith.constant 0 : index
      %15 = vector.load %arg7[%c0_11, %c1, %c0_12, %c0_13] : memref<3x3x3x64xbf16, #tpu.memory_space<vmem>>, vector<1x1x3x64xbf16>
      %16 = vector.shape_cast %15 : vector<1x1x3x64xbf16> to vector<3x64xbf16>
      %cst_14 = arith.constant dense<0.000000e+00> : vector<32x64xf32>
      %17 = tpu.matmul %14, %16, %cst_14 {dimension_numbers = #tpu.dot_dimension_numbers<[1], [0], [0], [1], [0, 0, 1, 1], [], []>} : vector<32x3xbf16>, vector<3x64xbf16>, vector<32x64xf32> -> vector<32x64xf32>
      %18 = arith.addf %13, %17 : vector<32x64xf32>
      %19 = vector.extract_strided_slice %9 {offsets = [2, 0], sizes = [32, 3], strides = [1, 1]} : vector<34x3xbf16> to vector<32x3xbf16>
      %c0_15 = arith.constant 0 : index
      %c2 = arith.constant 2 : index
      %c0_16 = arith.constant 0 : index
      %c0_17 = arith.constant 0 : index
      %20 = vector.load %arg7[%c0_15, %c2, %c0_16, %c0_17] : memref<3x3x3x64xbf16, #tpu.memory_space<vmem>>, vector<1x1x3x64xbf16>
      %21 = vector.shape_cast %20 : vector<1x1x3x64xbf16> to vector<3x64xbf16>
      %cst_18 = arith.constant dense<0.000000e+00> : vector<32x64xf32>
      %22 = tpu.matmul %19, %21, %cst_18 {dimension_numbers = #tpu.dot_dimension_numbers<[1], [0], [0], [1], [0, 0, 1, 1], [], []>} : vector<32x3xbf16>, vector<3x64xbf16>, vector<32x64xf32> -> vector<32x64xf32>
      %23 = arith.addf %18, %22 : vector<32x64xf32>
      %c0_19 = arith.constant 0 : index
      %24 = arith.index_cast %arg12 : i32 to index
      %c0_20 = arith.constant 0 : index
      %c0_21 = arith.constant 0 : index
      %25 = vector.load %arg5[%c0_19, %24, %c0_20, %c0_21] : memref<1x16x34x3xbf16, #tpu.memory_space<vmem>>, vector<1x1x34x3xbf16>
      %26 = vector.shape_cast %25 : vector<1x1x34x3xbf16> to vector<34x3xbf16>
      %27 = vector.extract_strided_slice %26 {offsets = [0, 0], sizes = [32, 3], strides = [1, 1]} : vector<34x3xbf16> to vector<32x3xbf16>
      %c1_22 = arith.constant 1 : index
      %c0_23 = arith.constant 0 : index
      %c0_24 = arith.constant 0 : index
      %c0_25 = arith.constant 0 : index
      %28 = vector.load %arg7[%c1_22, %c0_23, %c0_24, %c0_25] : memref<3x3x3x64xbf16, #tpu.memory_space<vmem>>, vector<1x1x3x64xbf16>
      %29 = vector.shape_cast %28 : vector<1x1x3x64xbf16> to vector<3x64xbf16>
      %cst_26 = arith.constant dense<0.000000e+00> : vector<32x64xf32>
      %30 = tpu.matmul %27, %29, %cst_26 {dimension_numbers = #tpu.dot_dimension_numbers<[1], [0], [0], [1], [0, 0, 1, 1], [], []>} : vector<32x3xbf16>, vector<3x64xbf16>, vector<32x64xf32> -> vector<32x64xf32>
      %31 = arith.addf %23, %30 : vector<32x64xf32>
      %32 = vector.extract_strided_slice %26 {offsets = [1, 0], sizes = [32, 3], strides = [1, 1]} : vector<34x3xbf16> to vector<32x3xbf16>
      %c1_27 = arith.constant 1 : index
      %c1_28 = arith.constant 1 : index
      %c0_29 = arith.constant 0 : index
      %c0_30 = arith.constant 0 : index
      %33 = vector.load %arg7[%c1_27, %c1_28, %c0_29, %c0_30] : memref<3x3x3x64xbf16, #tpu.memory_space<vmem>>, vector<1x1x3x64xbf16>
      %34 = vector.shape_cast %33 : vector<1x1x3x64xbf16> to vector<3x64xbf16>
      %cst_31 = arith.constant dense<0.000000e+00> : vector<32x64xf32>
      %35 = tpu.matmul %32, %34, %cst_31 {dimension_numbers = #tpu.dot_dimension_numbers<[1], [0], [0], [1], [0, 0, 1, 1], [], []>} : vector<32x3xbf16>, vector<3x64xbf16>, vector<32x64xf32> -> vector<32x64xf32>
      %36 = arith.addf %31, %35 : vector<32x64xf32>
      %37 = vector.extract_strided_slice %26 {offsets = [2, 0], sizes = [32, 3], strides = [1, 1]} : vector<34x3xbf16> to vector<32x3xbf16>
      %c1_32 = arith.constant 1 : index
      %c2_33 = arith.constant 2 : index
      %c0_34 = arith.constant 0 : index
      %c0_35 = arith.constant 0 : index
      %38 = vector.load %arg7[%c1_32, %c2_33, %c0_34, %c0_35] : memref<3x3x3x64xbf16, #tpu.memory_space<vmem>>, vector<1x1x3x64xbf16>
      %39 = vector.shape_cast %38 : vector<1x1x3x64xbf16> to vector<3x64xbf16>
      %cst_36 = arith.constant dense<0.000000e+00> : vector<32x64xf32>
      %40 = tpu.matmul %37, %39, %cst_36 {dimension_numbers = #tpu.dot_dimension_numbers<[1], [0], [0], [1], [0, 0, 1, 1], [], []>} : vector<32x3xbf16>, vector<3x64xbf16>, vector<32x64xf32> -> vector<32x64xf32>
      %41 = arith.addf %36, %40 : vector<32x64xf32>
      %c0_37 = arith.constant 0 : index
      %42 = arith.index_cast %arg12 : i32 to index
      %c0_38 = arith.constant 0 : index
      %c0_39 = arith.constant 0 : index
      %43 = vector.load %arg6[%c0_37, %42, %c0_38, %c0_39] : memref<1x16x34x3xbf16, #tpu.memory_space<vmem>>, vector<1x1x34x3xbf16>
      %44 = vector.shape_cast %43 : vector<1x1x34x3xbf16> to vector<34x3xbf16>
      %45 = vector.extract_strided_slice %44 {offsets = [0, 0], sizes = [32, 3], strides = [1, 1]} : vector<34x3xbf16> to vector<32x3xbf16>
      %c2_40 = arith.constant 2 : index
      %c0_41 = arith.constant 0 : index
      %c0_42 = arith.constant 0 : index
      %c0_43 = arith.constant 0 : index
      %46 = vector.load %arg7[%c2_40, %c0_41, %c0_42, %c0_43] : memref<3x3x3x64xbf16, #tpu.memory_space<vmem>>, vector<1x1x3x64xbf16>
      %47 = vector.shape_cast %46 : vector<1x1x3x64xbf16> to vector<3x64xbf16>
      %cst_44 = arith.constant dense<0.000000e+00> : vector<32x64xf32>
      %48 = tpu.matmul %45, %47, %cst_44 {dimension_numbers = #tpu.dot_dimension_numbers<[1], [0], [0], [1], [0, 0, 1, 1], [], []>} : vector<32x3xbf16>, vector<3x64xbf16>, vector<32x64xf32> -> vector<32x64xf32>
      %49 = arith.addf %41, %48 : vector<32x64xf32>
      %50 = vector.extract_strided_slice %44 {offsets = [1, 0], sizes = [32, 3], strides = [1, 1]} : vector<34x3xbf16> to vector<32x3xbf16>
      %c2_45 = arith.constant 2 : index
      %c1_46 = arith.constant 1 : index
      %c0_47 = arith.constant 0 : index
      %c0_48 = arith.constant 0 : index
      %51 = vector.load %arg7[%c2_45, %c1_46, %c0_47, %c0_48] : memref<3x3x3x64xbf16, #tpu.memory_space<vmem>>, vector<1x1x3x64xbf16>
      %52 = vector.shape_cast %51 : vector<1x1x3x64xbf16> to vector<3x64xbf16>
      %cst_49 = arith.constant dense<0.000000e+00> : vector<32x64xf32>
      %53 = tpu.matmul %50, %52, %cst_49 {dimension_numbers = #tpu.dot_dimension_numbers<[1], [0], [0], [1], [0, 0, 1, 1], [], []>} : vector<32x3xbf16>, vector<3x64xbf16>, vector<32x64xf32> -> vector<32x64xf32>
      %54 = arith.addf %49, %53 : vector<32x64xf32>
      %55 = vector.extract_strided_slice %44 {offsets = [2, 0], sizes = [32, 3], strides = [1, 1]} : vector<34x3xbf16> to vector<32x3xbf16>
      %c2_50 = arith.constant 2 : index
      %c2_51 = arith.constant 2 : index
      %c0_52 = arith.constant 0 : index
      %c0_53 = arith.constant 0 : index
      %56 = vector.load %arg7[%c2_50, %c2_51, %c0_52, %c0_53] : memref<3x3x3x64xbf16, #tpu.memory_space<vmem>>, vector<1x1x3x64xbf16>
      %57 = vector.shape_cast %56 : vector<1x1x3x64xbf16> to vector<3x64xbf16>
      %cst_54 = arith.constant dense<0.000000e+00> : vector<32x64xf32>
      %58 = tpu.matmul %55, %57, %cst_54 {dimension_numbers = #tpu.dot_dimension_numbers<[1], [0], [0], [1], [0, 0, 1, 1], [], []>} : vector<32x3xbf16>, vector<3x64xbf16>, vector<32x64xf32> -> vector<32x64xf32>
      %59 = arith.addf %54, %58 : vector<32x64xf32>
      %60 = arith.index_cast %arg12 : i32 to index
      %c0_55 = arith.constant 0 : index
      %c0_56 = arith.constant 0 : index
      %61 = vector.load %arg11[%60, %c0_55, %c0_56] : memref<16x32x64xf32, #tpu.memory_space<vmem>>, vector<1x32x64xf32>
      %62 = vector.shape_cast %61 : vector<1x32x64xf32> to vector<32x64xf32>
      %63 = arith.addf %62, %59 : vector<32x64xf32>
      %64 = arith.index_cast %arg12 : i32 to index
      %c0_57 = arith.constant 0 : index
      %c0_58 = arith.constant 0 : index
      %65 = vector.load %arg11[%64, %c0_57, %c0_58] : memref<16x32x64xf32, #tpu.memory_space<vmem>>, vector<1x32x64xf32>
      %66 = vector.shape_cast %65 : vector<1x32x64xf32> to vector<32x64xf32>
      %67 = vector.shape_cast %63 : vector<32x64xf32> to vector<1x32x64xf32>
      tpu.vector_store %arg11[%64, %c0_57, %c0_58], %67 {strides = array<i32>} : memref<16x32x64xf32, #tpu.memory_space<vmem>>, vector<1x32x64xf32>,
    }
    %c16_i32_2 = arith.constant 16 : i32
    %c0_i32_3 = arith.constant 0 : i32
    %4 = arith.cmpi eq, %arg3, %c0_i32_3 : i32
    %5 = arith.extui %4 : i1 to i32
    %c0_i32_4 = arith.constant 0 : i32
    %6 = arith.cmpi ne, %5, %c0_i32_4 : i32
    scf.if %6 {
      %c0 = arith.constant 0 : index
      %c0_5 = arith.constant 0 : index
      %c0_6 = arith.constant 0 : index
      %7 = vector.load %arg11[%c0, %c0_5, %c0_6] : memref<16x32x64xf32, #tpu.memory_space<vmem>>, vector<16x32x64xf32>
      %c0_7 = arith.constant 0 : index
      %c0_8 = arith.constant 0 : index
      %c0_9 = arith.constant 0 : index
      %8 = vector.load %arg8[%c0_7, %c0_8, %c0_9] : memref<1x1x64xf32, #tpu.memory_space<vmem>>, vector<1x1x64xf32>
      %9 = vector.broadcast %8 : vector<1x1x64xf32> to vector<16x32x64xf32>
      %10 = arith.mulf %7, %9 : vector<16x32x64xf32>
      %c0_10 = arith.constant 0 : index
      %c0_11 = arith.constant 0 : index
      %c0_12 = arith.constant 0 : index
      %11 = vector.load %arg9[%c0_10, %c0_11, %c0_12] : memref<1x1x64xf32, #tpu.memory_space<vmem>>, vector<1x1x64xf32>
      %12 = vector.broadcast %11 : vector<1x1x64xf32> to vector<16x32x64xf32>
      %13 = arith.addf %10, %12 : vector<16x32x64xf32>
      %14 = arith.truncf %13 : vector<16x32x64xf32> to vector<16x32x64xbf16>
      %c0_13 = arith.constant 0 : index
      %c0_14 = arith.constant 0 : index
      %c0_15 = arith.constant 0 : index
      %c0_16 = arith.constant 0 : index
      %15 = vector.load %arg10[%c0_13, %c0_14, %c0_15, %c0_16] : memref<1x16x32x64xbf16, #tpu.memory_space<vmem>>, vector<1x16x32x64xbf16>
      %16 = vector.shape_cast %15 : vector<1x16x32x64xbf16> to vector<16x32x64xbf16>
      %17 = vector.shape_cast %14 : vector<16x32x64xbf16> to vector<1x16x32x64xbf16>
      tpu.vector_store %arg10[%c0_13, %c0_14, %c0_15, %c0_16], %17 {strides = array<i32>} : memref<1x16x32x64xbf16, #tpu.memory_space<vmem>>, vector<1x16x32x64xbf16>,
    } else {
    }
    return
  }
  func.func @transform_0(%arg0: i32, %arg1: i32, %arg2: i32, %arg3: i32) -> (i32, i32, i32, i32) {
    %c0_i32 = arith.constant 0 : i32
    %c0_i32_0 = arith.constant 0 : i32
    return %arg0, %arg2, %c0_i32, %arg3 : i32, i32, i32, i32
  }
  func.func @transform_1(%arg0: i32, %arg1: i32, %arg2: i32, %arg3: i32) -> (i32, i32, i32, i32) {
    %c0_i32 = arith.constant 0 : i32
    %c0_i32_0 = arith.constant 0 : i32
    return %arg0, %arg2, %c0_i32, %arg3 : i32, i32, i32, i32
  }
  func.func @transform_2(%arg0: i32, %arg1: i32, %arg2: i32, %arg3: i32) -> (i32, i32, i32, i32) {
    %c0_i32 = arith.constant 0 : i32
    %c0_i32_0 = arith.constant 0 : i32
    return %arg0, %arg2, %c0_i32, %arg3 : i32, i32, i32, i32
  }
  func.func @transform_3(%arg0: i32, %arg1: i32, %arg2: i32, %arg3: i32) -> (i32, i32, i32, i32) {
    %c0_i32 = arith.constant 0 : i32
    %c0_i32_0 = arith.constant 0 : i32
    %c0_i32_1 = arith.constant 0 : i32
    return %c0_i32, %c0_i32_0, %arg3, %arg1 : i32, i32, i32, i32
  }
  func.func @transform_4(%arg0: i32, %arg1: i32, %arg2: i32, %arg3: i32) -> (i32, i32, i32) {
    %c0_i32 = arith.constant 0 : i32
    %c0_i32_0 = arith.constant 0 : i32
    %c0_i32_1 = arith.constant 0 : i32
    return %c0_i32, %c0_i32_0, %arg1 : i32, i32, i32
  }
  func.func @transform_5(%arg0: i32, %arg1: i32, %arg2: i32, %arg3: i32) -> (i32, i32, i32) {
    %c0_i32 = arith.constant 0 : i32
    %c0_i32_0 = arith.constant 0 : i32
    %c0_i32_1 = arith.constant 0 : i32
    return %c0_i32, %c0_i32_0, %arg1 : i32, i32, i32
  }
  func.func @transform_6(%arg0: i32, %arg1: i32, %arg2: i32, %arg3: i32) -> (i32, i32, i32, i32) {
    %c0_i32 = arith.constant 0 : i32
    %c0_i32_0 = arith.constant 0 : i32
    return %arg0, %arg2, %c0_i32, %arg1 : i32, i32, i32, i32
  }
}

</mosaic_0001>

<bundles_post_ra>
// kernel: tpu_custom_call.1
= control target key start
LH: loop header
LB: loop body
LE: loop exit
PB: predicated region body
PF: predicated region fallthrough
CT: control target
= control target key end

     0   :  { %11 = vsyncpa [#allocation4], 0  ;;  %s2456_s0 = inlined_call_operand.vmem [shape: bf16[1,32,34,3], index: 0, kind: input, shape index: {}]   ;;  %s2457_s1 = inlined_call_operand.vmem [shape: bf16[1,32,34,3], index: 1, kind: input, shape index: {}]   ;;  %s2458_s2 = inlined_call_operand.vmem [shape: bf16[1,32,34,3], index: 2, kind: input, shape index: {}]   ;;  %s2459_s3 = inlined_call_operand.vmem [shape: bf16[3,3,3,64], index: 3, kind: input, shape index: {}]   ;;  %s2460_s4 = inlined_call_operand.vmem [shape: f32[1,1,64], index: 4, kind: input, shape index: {}]   ;;  %s2461_s5 = inlined_call_operand.vmem [shape: f32[1,1,64], index: 5, kind: input, shape index: {}]   ;;  %s2462_s6 = inlined_call_operand.hbm [shape: bf16[1,32,32,64], index: 6, kind: output, shape index: {}]  }
   0x1   :  { %13 = vsyncpa [#allocation4 + $0x1], 0  ;;  %s1823_s21 = smov 0   ;;  %s1825_s22 = smov 0  }
   0x2   :  { %s1827_s23 = smov 0   ;;  %s1829_s24 = smov 0  }
   0x3   :  { %s1831_s25 = smov 0   ;;  %s1833_s26 = smov 0  }
   0x4 LB: > { %2467 = sst [smem:[#allocation6_spill]] %s1766_s23  ;;  %s1539_s27 = sadd.s32 4294967295, %s1778_s26   ;;  %s1778_s26 = sphi %s1833_s26, %s19_s26   ;;  %s1774_s25 = sphi %s1831_s25, %s2480_s25   ;;  %s1770_s24 = sphi %s1829_s24, %s2479_s24   ;;  %s1766_s23 = sphi %s1827_s23, %s2478_s23   ;;  %s1762_s22 = sphi %s1825_s22, %s2482_s22   ;;  %s1758_s21 = sphi %s1823_s21, %s2481_s21  }
   0x5   : > { %2468 = sst [smem:[#allocation7_spill]] %s1774_s25  ;;  %s1540_s28 = sadd.s32 4294967294, %s1778_s26  }
   0x6   : > { %s37_s29 = sadd.s32 1, %s1774_s25  ;;  %s226_s30 = sadd.s32 1, %s1766_s23 }
   0x7   : > { %p39_p0 = scmp.ge.s32.totalorder %s37_s29, 2  ;;  %p236_p1 = scmp.ne.s32.totalorder %s1766_s23, %s1762_s22 }
   0x8   : > { %p237_p2 = scmp.eq.s32.totalorder %s1539_s27, 1  ;;  %p242_p3 = scmp.ne.s32.totalorder %s1762_s22, %s1758_s21 }
   0x9   : > { %s2484_s29 = smov (%p39_p0, %s37_s29), 0  ;;  %p243_p5 = scmp.eq.s32.totalorder %s1540_s28, 1 }
   0xa   : > { %2469 = sst [smem:[#allocation8_spill]] %s2484_s29  ;;  %p1863_p4 = por %p237_p2, %p236_p1 }
   0xb   : > { %s220_s8 = ssub.s32 %s1774_s25, %s2484_s29  ;;  %p1546_p6 = scmp.ge.s32.totalorder %s1778_s26, 1 }
   0xc   : > { %p224_p7 = scmp.eq.s32.totalorder %s220_s8, 0  ;;  %p1870_p8 = por %p243_p5, %p242_p3 }
   0xd   : > { %p334_p9 = scmp.lt.s32.totalorder %s1778_s26, 3 }
   0xe   : > { %s1876_s10 = scalar_select %p224_p7, %s1766_s23, %s226_s30  }
   0xf   : > { %p335_p10 = pnand %p1546_p6, %p334_p9 }
  0x10   : > { %2472 = sst [smem:[#allocation9_spill]] %s1876_s10  ;;  %s2463_s11 = sand.u32 (!%p335_p10), 1, %s1762_s22  }
  0x11   : > { %338 = sbr.rel (%p335_p10) target bundleno = 390 (0x186), region = 44  ;;  %s1548_s12 = sshll.u32 (!%p335_p10), %s1770_s24, 4 }
  0x12   : > { %s1882_s13 = sshll.u32 (!%p335_p10), %s2463_s11, 8  ;;  %p414_p11 = scmp.lt.s32.totalorder (!%p335_p10), %s1548_s12, 31 }
  0x13   : > { %s2027_s8 = scalar_lea.vmem (!%p335_p10), [#allocation3], %s1882_s13 }
  0x16   : > { %vm472_vm0 = vcmask 523264   ;;  %v1784_v0 = vmov 0.0   ;;  %s2486_s12 = smov (!%p414_p11, %s1548_s12), 31 }
  0x17   : > { %473 = vst.msk [vmem:[#allocation2] sm:$0xff] %vm472_vm0, %v1784_v0  ;;  %s1892_s14 = smul.u32 20, %s2486_s12  ;;  %s2029_s12 = smov 0  }
  0x18   : > { %474 = vst.msk [vmem:[#allocation2 + $0x8] sm:$0xff] %vm472_vm0, %v1784_v0 }
  0x19   : > { %475 = vst.msk [vmem:[#allocation2 + $0x10] sm:$0xff] %vm472_vm0, %v1784_v0 }
  0x1a   : > { %476 = vst.msk [vmem:[#allocation2 + $0x18] sm:$0xff] %vm472_vm0, %v1784_v0 }
  0x1b   : > { %477 = vst.msk [vmem:[#allocation2 + $0x20] sm:$0xff] %vm472_vm0, %v1784_v0 }
  0x1c   : > { %478 = vst.msk [vmem:[#allocation2 + $0x28] sm:$0xff] %vm472_vm0, %v1784_v0 }
  0x1d   : > { %479 = vst.msk [vmem:[#allocation2 + $0x30] sm:$0xff] %vm472_vm0, %v1784_v0 }
  0x1e   : > { %480 = vst.msk [vmem:[#allocation2 + $0x38] sm:$0xff] %vm472_vm0, %v1784_v0 }
  0x1f   : > { %481 = vst.msk [vmem:[#allocation2 + $0x40] sm:$0xff] %vm472_vm0, %v1784_v0 }
  0x20   : > { %482 = vst.msk [vmem:[#allocation2 + $0x48] sm:$0xff] %vm472_vm0, %v1784_v0 }
  0x21   : > { %483 = vst.msk [vmem:[#allocation2 + $0x50] sm:$0xff] %vm472_vm0, %v1784_v0 }
  0x22   : > { %484 = vst.msk [vmem:[#allocation2 + $0x58] sm:$0xff] %vm472_vm0, %v1784_v0 }
  0x23   : > { %485 = vst.msk [vmem:[#allocation2 + $0x60] sm:$0xff] %vm472_vm0, %v1784_v0 }
  0x24   : > { %486 = vst.msk [vmem:[#allocation2 + $0x68] sm:$0xff] %vm472_vm0, %v1784_v0 }
  0x25   : > { %487 = vst.msk [vmem:[#allocation2 + $0x70] sm:$0xff] %vm472_vm0, %v1784_v0 }
  0x26   : > { %488 = vst.msk [vmem:[#allocation2 + $0x78] sm:$0xff] %vm472_vm0, %v1784_v0 }
  0x27   : > { %489 = vst.msk [vmem:[#allocation2 + $0x80] sm:$0xff] %vm472_vm0, %v1784_v0 }
  0x28   : > { %490 = vst.msk [vmem:[#allocation2 + $0x88] sm:$0xff] %vm472_vm0, %v1784_v0 }
  0x29   : > { %491 = vst.msk [vmem:[#allocation2 + $0x90] sm:$0xff] %vm472_vm0, %v1784_v0 }
  0x2a   : > { %492 = vst.msk [vmem:[#allocation2 + $0x98] sm:$0xff] %vm472_vm0, %v1784_v0 }
  0x2b   : > { %493 = vst.msk [vmem:[#allocation2 + $0xa0] sm:$0xff] %vm472_vm0, %v1784_v0 }
  0x2c   : > { %494 = vst.msk [vmem:[#allocation2 + $0xa8] sm:$0xff] %vm472_vm0, %v1784_v0 }
  0x2d   : > { %495 = vst.msk [vmem:[#allocation2 + $0xb0] sm:$0xff] %vm472_vm0, %v1784_v0 }
  0x2e   : > { %496 = vst.msk [vmem:[#allocation2 + $0xb8] sm:$0xff] %vm472_vm0, %v1784_v0 }
  0x2f   : > { %497 = vst.msk [vmem:[#allocation2 + $0xc0] sm:$0xff] %vm472_vm0, %v1784_v0 }
  0x30   : > { %498 = vst.msk [vmem:[#allocation2 + $0xc8] sm:$0xff] %vm472_vm0, %v1784_v0 }
  0x31   : > { %499 = vst.msk [vmem:[#allocation2 + $0xd0] sm:$0xff] %vm472_vm0, %v1784_v0 }
  0x32   : > { %500 = vst.msk [vmem:[#allocation2 + $0xd8] sm:$0xff] %vm472_vm0, %v1784_v0 }
  0x33   : > { %501 = vst.msk [vmem:[#allocation2 + $0xe0] sm:$0xff] %vm472_vm0, %v1784_v0 }
  0x34   : > { %502 = vst.msk [vmem:[#allocation2 + $0xe8] sm:$0xff] %vm472_vm0, %v1784_v0 }
  0x35   : > { %503 = vst.msk [vmem:[#allocation2 + $0xf0] sm:$0xff] %vm472_vm0, %v1784_v0 }
  0x36   : > { %504 = vst.msk [vmem:[#allocation2 + $0xf8] sm:$0xff] %vm472_vm0, %v1784_v0 }
  0x37   : > { %505 = vst.msk [vmem:[#allocation2 + $0x100] sm:$0xff] %vm472_vm0, %v1784_v0 }
  0x38   : > { %506 = vst.msk [vmem:[#allocation2 + $0x108] sm:$0xff] %vm472_vm0, %v1784_v0 }
  0x39   : > { %507 = vst.msk [vmem:[#allocation2 + $0x110] sm:$0xff] %vm472_vm0, %v1784_v0 }
  0x3a   : > { %508 = vst.msk [vmem:[#allocation2 + $0x118] sm:$0xff] %vm472_vm0, %v1784_v0 }
  0x3b   : > { %509 = vst.msk [vmem:[#allocation2 + $0x120] sm:$0xff] %vm472_vm0, %v1784_v0 }
  0x3c   : > { %510 = vst.msk [vmem:[#allocation2 + $0x128] sm:$0xff] %vm472_vm0, %v1784_v0 }
  0x3d   : > { %511 = vst.msk [vmem:[#allocation2 + $0x130] sm:$0xff] %vm472_vm0, %v1784_v0 }
  0x3e   : > { %512 = vst.msk [vmem:[#allocation2 + $0x138] sm:$0xff] %vm472_vm0, %v1784_v0 }
  0x3f   : > { %513 = vst.msk [vmem:[#allocation2 + $0x140] sm:$0xff] %vm472_vm0, %v1784_v0 }
  0x40   : > { %514 = vst.msk [vmem:[#allocation2 + $0x148] sm:$0xff] %vm472_vm0, %v1784_v0 }
  0x41   : > { %515 = vst.msk [vmem:[#allocation2 + $0x150] sm:$0xff] %vm472_vm0, %v1784_v0 }
  0x42   : > { %516 = vst.msk [vmem:[#allocation2 + $0x158] sm:$0xff] %vm472_vm0, %v1784_v0 }
  0x43   : > { %517 = vst.msk [vmem:[#allocation2 + $0x160] sm:$0xff] %vm472_vm0, %v1784_v0 }
  0x44   : > { %518 = vst.msk [vmem:[#allocation2 + $0x168] sm:$0xff] %vm472_vm0, %v1784_v0 }
  0x45   : > { %519 = vst.msk [vmem:[#allocation2 + $0x170] sm:$0xff] %vm472_vm0, %v1784_v0 }
  0x46   : > { %520 = vst.msk [vmem:[#allocation2 + $0x178] sm:$0xff] %vm472_vm0, %v1784_v0 }
  0x47   : > { %521 = vst.msk [vmem:[#allocation2 + $0x180] sm:$0xff] %vm472_vm0, %v1784_v0 }
  0x48   : > { %522 = vst.msk [vmem:[#allocation2 + $0x188] sm:$0xff] %vm472_vm0, %v1784_v0 }
  0x49   : > { %523 = vst.msk [vmem:[#allocation2 + $0x190] sm:$0xff] %vm472_vm0, %v1784_v0 }
  0x4a   : > { %524 = vst.msk [vmem:[#allocation2 + $0x198] sm:$0xff] %vm472_vm0, %v1784_v0 }
  0x4b   : > { %525 = vst.msk [vmem:[#allocation2 + $0x1a0] sm:$0xff] %vm472_vm0, %v1784_v0 }
  0x4c   : > { %526 = vst.msk [vmem:[#allocation2 + $0x1a8] sm:$0xff] %vm472_vm0, %v1784_v0 }
  0x4d   : > { %527 = vst.msk [vmem:[#allocation2 + $0x1b0] sm:$0xff] %vm472_vm0, %v1784_v0 }
  0x4e   : > { %528 = vst.msk [vmem:[#allocation2 + $0x1b8] sm:$0xff] %vm472_vm0, %v1784_v0 }
  0x4f   : > { %529 = vst.msk [vmem:[#allocation2 + $0x1c0] sm:$0xff] %vm472_vm0, %v1784_v0 }
  0x50   : > { %530 = vst.msk [vmem:[#allocation2 + $0x1c8] sm:$0xff] %vm472_vm0, %v1784_v0 }
  0x51   : > { %531 = vst.msk [vmem:[#allocation2 + $0x1d0] sm:$0xff] %vm472_vm0, %v1784_v0 }
  0x52   : > { %532 = vst.msk [vmem:[#allocation2 + $0x1d8] sm:$0xff] %vm472_vm0, %v1784_v0 }
  0x53   : > { %533 = vst.msk [vmem:[#allocation2 + $0x1e0] sm:$0xff] %vm472_vm0, %v1784_v0 }
  0x54   : > { %534 = vst.msk [vmem:[#allocation2 + $0x1e8] sm:$0xff] %vm472_vm0, %v1784_v0 }
  0x55   : > { %535 = vst.msk [vmem:[#allocation2 + $0x1f0] sm:$0xff] %vm472_vm0, %v1784_v0 }
  0x56   : > { %536 = vst.msk [vmem:[#allocation2 + $0x1f8] sm:$0xff] %vm472_vm0, %v1784_v0 }
  0x57 LB: >> { %v1555_v1 = vld [vmem:[%s2459_s3 + $0x2] sm:$0x3]  ;;  %vm595_vm1 = vcmask 1040384   ;;  %vm596_vm2 = vcmask 1041408   ;;  %v1785_v2 = vmov 65535   ;;  %s2041_s19 = smul.u32 20, %s1782_s12  ;;  %s2473_s15 = scalar_lea.vmem %s2456_s0, %s1892_s14  ;;  %s1782_s12 = sphi %s2029_s12, %s542_s12  }
  0x58   : >> { %v597_v3 = vsel %vm595_vm1, 4294967295, %v1785_v2  ;;  %v551_v4 = vld [vmem:[%s2459_s3] sm:$0x3]  ;;  %v1568_v6 = vld [vmem:[%s2459_s3 + $0x4] sm:$0x3]  ;;  %s2474_s10 = scalar_lea.vmem %s2457_s1, %s1892_s14  ;;  %vm649_vm3 = vcmask 1046528   ;;  %s2475_s30 = scalar_lea.vmem %s2458_s2, %s1892_s14 }
  0x59   : >> { %v598_v5 = vsel %vm596_vm2, %v597_v3, 0  ;;  %v1572_v7 = vld [vmem:[%s2459_s3 + $0x6] sm:$0x3]  ;;  %v1583_v12 = vld [vmem:[%s2459_s3 + $0x8] sm:$0x3]  ;;  %s545_s16 = scalar_lea.vmem %s2473_s15, %s2041_s19  ;;  %s2070_s23 = scalar_lea.vmem %s2474_s10, %s2041_s19  ;;  %vm588_vm4 = vcmask 23552  }
  0x5a   : >> { %v600_v8 = vand.u32 %v1555_v1, %v598_v5  ;;  %v626_v9 = vand.u32 %v598_v5, %v551_v4  ;;  %v662_v10 = vand.u32 %v1568_v6, %v598_v5  ;;  %v713_v11 = vand.u32 %v1572_v7, %v598_v5  ;;  %v1590_v13 = vld [vmem:[%s2459_s3 + $0xc] sm:$0x3]  ;;  %v1601_v14 = vld [vmem:[%s2459_s3 + $0xe] sm:$0x3]  ;;  %v1615_v18 = vld [vmem:[%s545_s16] sm:$0xff]  ;;  %s833_s13 = scalar_lea.vmem %s2475_s30, %s2041_s19 }
  0x5b   : >> { %v768_v15 = vand.u32 %v1583_v12, %v598_v5  ;;  %v858_v16 = vand.u32 %v1590_v13, %v598_v5  ;;  %v913_v17 = vand.u32 %v1601_v14, %v598_v5  ;;  %v2072_v19 = vld [vmem:[%s545_s16 + $0x8] sm:$0xff]  ;;  %v550_v20 = vld [vmem:[%s545_s16 + $0x10] sm:$0x1]  ;;  %v2075_v22 = vld [vmem:[%s2070_s23] sm:$0xff]  ;;  %v569_v23 = vshrl.u32 %v1615_v18, 16 }
  0x5c   : >> { %609 = vmatpush.bf16.msra.mxu0 %v600_v8  ;;  %1625 = vmatpush.bf16.msra.mxu1 %v600_v8  ;;  %v563_v21 = vunpack.c.l.b16 %v550_v20  ;;  %v571_v24 = vshll.u32 %v1615_v18, 16  ;;  %v576_v25 = vshll.u32 %v2072_v19, 16  ;;  %v580_v26 = vshrl.u32 %v2072_v19, 16  ;;  %v1604_v30 = vld [vmem:[%s2459_s3 + $0x10] sm:$0x3]  ;;  %v1619_v43 = vld [vmem:[%s2070_s23 + $0x8] sm:$0xff] }
  0x5d   : >> { %671 = vmatpush.bf16.msra.mxu2 %v662_v10  ;;  %722 = vmatpush.bf16.msra.mxu3 %v713_v11  ;;  %v650_v28 = vrot.slane %v1615_v18, 1  ;;  %v651_v29 = vrot.slane %v2072_v19, 1  ;;  %v1586_v33 = vld [vmem:[%s2459_s3 + $0xa] sm:$0x3]  ;;  %vm567_vm5 = vsmask.f32 7424  ;;  %v952_v38 = vand.u32 %v1604_v30, %v598_v5 }
  0x5e   : >> { %v566_v27 = vpack.c.b16 %v563_v21, %v563_v21  ;;  %v573_v31 = vrot.slane %v571_v24, 1  ;;  %v578_v32 = vrot.slane %v576_v25, 1  ;;  %v807_v40 = vand.u32 %v1586_v33, %v598_v5  ;;  %v1621_v51 = vld [vmem:[%s833_s13] sm:$0xff]  ;;  %v693_v53 = vld [vmem:[%s2070_s23 + $0x10] sm:$0x1]  ;;  %v1622_v56 = vld [vmem:[%s833_s13 + $0x8] sm:$0xff] }
  0x5f   : >> { %v652_v35 = vsel %vm649_vm3, %v650_v28, %v651_v29  ;;  %v745_v44 = vshll.u32 %v2075_v22, 16  ;;  %v743_v45 = vshrl.u32 %v2075_v22, 16  ;;  %v749_v47 = vshll.u32 %v1619_v43, 16  ;;  %v838_v2 = vld [vmem:[%s833_s13 + $0x10] sm:$0x1]  ;;  %s1607_s23 = sshll.u32 %s1782_s12, 5 }
  0x60   : >> { %635 = vmatpush.bf16.msrb.mxu1 %v626_v9  ;;  %777 = vmatpush.bf16.msrb.mxu0 %v768_v15  ;;  %v584_v34 = vshll.u32 %v566_v27, 16  ;;  %v574_v36 = vor.u32 %v573_v31, %v569_v23  ;;  %v582_v37 = vor.u32 %v580_v26, %v578_v32  ;;  %v653_v48 = vrot.slane %v566_v27, 1  ;;  %s2130_s19 = scalar_lea.vmem [#allocation2], %s1607_s23  ;;  %s542_s12 = sadd.s32 1, %s1782_s12  }
  0x61   : >> { %867 = vmatpush.bf16.msrb.mxu2 %v858_v16  ;;  %922 = vmatpush.bf16.msrb.mxu3 %v913_v17  ;;  %v747_v46 = vrot.slane %v745_v44, 1  ;;  %v751_v50 = vrot.slane %v749_v47, 1  ;;  %v741_v55 = vunpack.c.l.b16 %v693_v53  ;;  %v890_v57 = vshll.u32 %v1621_v51, 16  ;;  %p539_p12 = scmp.ge.s32.totalorder %s542_s12, 16  }
  0x62   : >> { %1581 = vmatmul.msk.bf16.vlgmr.msra.gmra.mxu3 %vm588_vm4, %v2075_v22  ;;  %1569 = vmatmul.msk.bf16.vlgmr.msra.gmra.mxu2 %vm588_vm4, %v652_v35  ;;  %v586_v39 = vrot.slane %v584_v34, 1  ;;  %v579_v41 = vsel %vm567_vm5, %v574_v36, %v578_v32  ;;  %v654_v52 = vsel %vm649_vm3, %v651_v29, %v653_v48  ;;  %v888_v59 = vshrl.u32 %v1621_v51, 16  ;;  %s1624_s14 = sshll.u32 (%p539_p12), %s1770_s24, 8  ;;  %s1341_s25 = sshll.u32 (%p539_p12), %s2027_s8, 4  ;;  %s1342_s25 = int_to_ptr.vmem [resolvable:$true] %s1341_s25 }
  0x63   : >> { %1564 = vmatmul.msk.bf16.vlgmr.msra.gmra.mxu0 %vm588_vm4, %v579_v41  ;;  %v748_v49 = vor.u32 %v747_v46, %v743_v45  ;;  %v742_v58 = vpack.c.b16 %v741_v55, %v741_v55  ;;  %v892_v60 = vrot.slane %v890_v57, 1  ;;  %v894_v61 = vshll.u32 %v1622_v56, 16  ;;  %s1340_s24 = scalar_lea.hbm (%p539_p12), %s2462_s6, %s1624_s14  ;;  %s2476_s10 = sand.u32 (%p539_p12), 1, %s1762_s22  }
  0x64   : >> { %v587_v42 = vsel %vm567_vm5, %v582_v37, %v586_v39  ;;  %961 = vmatpush.bf16.msra.mxu0 %v952_v38  ;;  %v753_v62 = vshrl.u32 %v1619_v43, 16  ;;  %v886_v6 = vunpack.c.l.b16 %v838_v2  ;;  %v898_v9 = vshrl.u32 %v1622_v56, 16  ;;  %s1343_s29 = sshll.u32 (%p539_p12), %s1340_s24, 4  ;;  %s1325_s11 = scalar_lea.sflag (%p539_p12), [#allocation4], %s2476_s10  ;;  %s1344_s29 = int_to_ptr.hbm [resolvable:$true] %s1343_s29 }
  0x65   : >> { %1565 = vmatmul.msk.bf16.vlgmr.msra.gmra.mxu1 %vm588_vm4, %v587_v42  ;;  %v752_v54 = vsel %vm567_vm5, %v748_v49, %v751_v50  ;;  %v757_v63 = vshll.u32 %v742_v58, 16  ;;  %v893_v0 = vor.u32 %v892_v60, %v888_v59  ;;  %v896_v1 = vrot.slane %v894_v61, 1  ;;  %v979_v59 = vld [vmem:[%s2130_s19] sm:$0xff]  ;;  %s1710_s17 = sshra.s32 (%p539_p12), %s1344_s29, 4  ;;  %s1716_s23 = scalar_lea.hbm (%p539_p12), %s2462_s6, 512  ;;  %s1711_s17 = int_to_ptr.hbm [resolvable:$true] %s1710_s17 }
  0x66   : >> { %816 = vmatpush.bf16.msra.mxu1 %v807_v40  ;;  %v755_v3 = vor.u32 %v753_v62, %v751_v50  ;;  %v887_v8 = vpack.c.b16 %v886_v6, %v886_v6  ;;  %v940_v13 = vrot.slane %v1621_v51, 1  ;;  %v941_v14 = vrot.slane %v1622_v56, 1  ;;  %s1712_s20 = scalar_lea.hbm (%p539_p12), %s1711_s17, 256  ;;  %p1717_p2 = scmp.lt.s32.totalorder (%p539_p12), %s1711_s17, %s2462_s6 }
  0x67   : >> { %v759_v4 = vrot.slane %v757_v63, 1  ;;  %v897_v5 = vsel %vm567_vm5, %v893_v0, %v896_v1  ;;  %v900_v11 = vor.u32 %v898_v9, %v896_v1  ;;  %v795_v16 = vrot.slane %v2075_v22, 1  ;;  %v980_v9 = vld [vmem:[%s2130_s19 + $0x8] sm:$0xff]  ;;  %p1713_p13 = scmp.ne.s32.totalorder (%p539_p12), %s1711_s17, %s1712_s20  ;;  %p1718_p3 = scmp.lt.s32.totalorder (%p539_p12), %s1716_s23, %s1712_s20 }
  0x68   : >> { %v902_v10 = vshll.u32 %v887_v8, 16  ;;  %v796_v17 = vrot.slane %v1619_v43, 1  ;;  %v798_v21 = vrot.slane %v742_v58, 1  ;;  %vm1259_vm6 = vcmask (%p539_p12), 519168  }
  0x69   : >> { %v760_v7 = vsel %vm567_vm5, %v755_v3, %v759_v4  ;;  %p1714_p0 = pnand (%p539_p12), %p1713_p13, %p1863_p4  ;;  %p1719_p5 = por (%p539_p12), %p1718_p3, %p1717_p2 }
  0x6a   : >> { %v904_v12 = vrot.slane %v902_v10, 1  ;;  %v797_v20 = vsel %vm649_vm3, %v795_v16, %v796_v17  ;;  %v799_v24 = vsel %vm649_vm3, %v796_v17, %v798_v21 }
  0x6b   : > { %p1715_p1 = pneg (%p539_p12), %p1714_p0 }
  0x6c   : >> { %v905_v15 = vsel %vm567_vm5, %v900_v11, %v904_v12 }
  0x6d   : > { %p1720_p6 = pnand (%p539_p12), %p1719_p5, %p1715_p1 }
  0x72   : >> { %1582 = vmatmul.msk.bf16.gmra.mxu3 %vm588_vm4, %v1619_v43  ;;  %1570 = vmatmul.msk.bf16.gmra.mxu2 %vm588_vm4, %v654_v52 }
  0x73   : >> { %1584 = vmatmul.msk.bf16.vlgmr.msrb.gmra.mxu0 %vm588_vm4, %v752_v54 }
  0x75   : >> { %1566 = vmatmul.msk.bf16.vlgmr.msrb.gmra.mxu1 %vm588_vm4, %v1615_v18  ;;  %v942_v18 = vsel %vm649_vm3, %v940_v13, %v941_v14 }
  0x82   : >> { %1602 = vmatmul.msk.bf16.vlgmr.msrb.gmra.mxu3 %vm588_vm4, %v897_v5  ;;  %1599 = vmatmul.msk.bf16.vlgmr.msrb.gmra.mxu2 %vm588_vm4, %v1621_v51 }
  0x83   : >> { %1585 = vmatmul.msk.bf16.gmra.mxu0 %vm588_vm4, %v760_v7 }
  0x85   : >> { %1567 = vmatmul.msk.bf16.gmra.mxu1 %vm588_vm4, %v2072_v19  ;;  %v943_v19 = vrot.slane %v887_v8, 1 }
  0x87   : >> { %v944_v23 = vsel %vm649_vm3, %v941_v14, %v943_v19 }
  0x92   : >> { %1603 = vmatmul.msk.bf16.gmra.mxu3 %vm588_vm4, %v905_v15  ;;  %1600 = vmatmul.msk.bf16.gmra.mxu2 %vm588_vm4, %v1622_v56 }
  0x93   : >> { %1605 = vmatmul.msk.bf16.vlgmr.msra.gmra.mxu0 %vm588_vm4, %v942_v18 }
  0x95   : >> { %1587 = vmatmul.msk.bf16.vlgmr.msra.gmra.mxu1 %vm588_vm4, %v797_v20 }
  0xa3   : >> { %1606 = vmatmul.msk.bf16.gmra.mxu0 %vm588_vm4, %v944_v23  ;;  %v981_v23 = vld [vmem:[%s2130_s19 + $0x10] sm:$0xff] }
  0xa5   : >> { %1588 = vmatmul.msk.bf16.gmra.mxu1 %vm588_vm4, %v799_v24 }
  0xe0   : >> { %v611_v22 = vpop.f32.mrf.mxu0 }
  0xe2   : >> { %v616_v25 = vpop.f32.mrf.mxu1 }
  0xe5   : >> { %v673_v26 = vpop.f32.mrf.mxu2  ;;  %v724_v27 = vpop.f32.mrf.mxu3 }
  0xe8   : >> { %v613_v28 = vpop.f32.mrf.mxu0 }
  0xea   : >> { %v618_v29 = vpop.f32.mrf.mxu1 }
  0xed   : >> { %v675_v30 = vpop.f32.mrf.mxu2  ;;  %v726_v33 = vpop.f32.mrf.mxu3 }
  0xf0   : >> { %v779_v31 = vpop.f32.mrf.mxu0 }
  0xf2   : >> { %v637_v32 = vpop.f32.mrf.mxu1 }
  0xf3   : >> { %v638_v41 = vadd.f32 %v637_v32, %v611_v22 }
  0xf5   : >> { %v678_v36 = vpop.f32.mrf.mxu2  ;;  %v729_v37 = vpop.f32.mrf.mxu3  ;;  %v683_v43 = vadd.f32 %v673_v26, %v638_v41 }
  0xf7   : >> { %v734_v46 = vadd.f32 %v724_v27, %v683_v43 }
  0xf8   : >> { %v781_v34 = vpop.f32.mrf.mxu0 }
  0xf9   : >> { %v789_v50 = vadd.f32 %v779_v31, %v734_v46 }
  0xfa   : >> { %v639_v35 = vpop.f32.mrf.mxu1 }
  0xfb   : >> { %v640_v47 = vadd.f32 %v639_v35, %v613_v28 }
  0xfd   : >> { %v680_v40 = vpop.f32.mrf.mxu2  ;;  %v731_v42 = vpop.f32.mrf.mxu3  ;;  %v684_v51 = vadd.f32 %v675_v30, %v640_v47 }
  0xff   : >> { %v735_v55 = vadd.f32 %v726_v33, %v684_v51  ;;  %v982_v33 = vld [vmem:[%s2130_s19 + $0x18] sm:$0xff] }
 0x100   : >> { %v784_v38 = vpop.f32.mrf.mxu0 }
 0x101   : >> { %v790_v61 = vadd.f32 %v781_v34, %v735_v55 }
 0x102   : >> { %v642_v39 = vpop.f32.mrf.mxu1 }
 0x103   : >> { %v643_v56 = vadd.f32 %v642_v39, %v616_v25 }
 0x105   : >> { %v869_v48 = vpop.f32.mrf.mxu2  ;;  %v924_v49 = vpop.f32.mrf.mxu3  ;;  %v685_v62 = vadd.f32 %v678_v36, %v643_v56 }
 0x107   : >> { %v736_v5 = vadd.f32 %v729_v37, %v685_v62  ;;  %v2150_v37 = vld [vmem:[%s2460_s4] ss:$0 sm:$0xff] (%p539_p12) }
 0x108   : >> { %v786_v44 = vpop.f32.mrf.mxu0 }
 0x109   : >> { %v791_v10 = vadd.f32 %v784_v38, %v736_v5  ;;  %v2155_v38 = vld [vmem:[%s2461_s5] ss:$0 sm:$0xff] (%p539_p12) }
 0x10a   : >> { %v644_v45 = vpop.f32.mrf.mxu1 }
 0x10b   : >> { %v645_v6 = vadd.f32 %v644_v45, %v618_v29 }
 0x10d   : >> { %v871_v60 = vpop.f32.mrf.mxu2  ;;  %v926_v0 = vpop.f32.mrf.mxu3  ;;  %v686_v11 = vadd.f32 %v680_v40, %v645_v6 }
 0x10f   : >> { %v737_v18 = vadd.f32 %v731_v42, %v686_v11 }
 0x110   : >> { %v963_v53 = vpop.f32.mrf.mxu0 }
 0x111   : >> { %v792_v24 = vadd.f32 %v786_v44, %v737_v18 }
 0x112   : >> { %v818_v52 = vpop.f32.mrf.mxu1 }
 0x113   : >> { %v828_v54 = vadd.f32 %v818_v52, %v789_v50 }
 0x115   : >> { %v879_v57 = vadd.f32 %v869_v48, %v828_v54  ;;  %v874_v13 = vpop.f32.mrf.mxu2  ;;  %v929_v17 = vpop.f32.mrf.mxu3 }
 0x117   : >> { %v934_v58 = vadd.f32 %v924_v49, %v879_v57 }
 0x118   : >> { %v965_v4 = vpop.f32.mrf.mxu0 }
 0x119   : >> { %v973_v63 = vadd.f32 %v963_v53, %v934_v58 }
 0x11a   : >> { %v820_v1 = vpop.f32.mrf.mxu1 }
 0x11b   : >> { %v983_v2 = vadd.f32 %v979_v59, %v973_v63  ;;  %v829_v3 = vadd.f32 %v820_v1, %v790_v61 }
 0x11d   : >> { %988 = vst.msk [vmem:[%s2130_s19] sm:$0xff] %vm472_vm0, %v983_v2  ;;  %v880_v7 = vadd.f32 %v871_v60, %v829_v3  ;;  %v876_v28 = vpop.f32.mrf.mxu2  ;;  %v931_v30 = vpop.f32.mrf.mxu3 }
 0x11f   : >> { %v935_v8 = vadd.f32 %v926_v0, %v880_v7 }
 0x120   : >> { %v968_v19 = vpop.f32.mrf.mxu0 }
 0x121   : >> { %v974_v12 = vadd.f32 %v965_v4, %v935_v8 }
 0x122   : >> { %v823_v14 = vpop.f32.mrf.mxu1 }
 0x123   : >> { %v984_v15 = vadd.f32 %v980_v9, %v974_v12  ;;  %v830_v16 = vadd.f32 %v823_v14, %v791_v10 }
 0x125   : >> { %989 = vst.msk [vmem:[%s2130_s19 + $0x8] sm:$0xff] %vm472_vm0, %v984_v15  ;;  %v881_v20 = vadd.f32 %v874_v13, %v830_v16 }
 0x127   : >> { %v936_v21 = vadd.f32 %v929_v17, %v881_v20 }
 0x128   : >> { %v970_v32 = vpop.f32.mrf.mxu0 }
 0x129   : >> { %v975_v22 = vadd.f32 %v968_v19, %v936_v21 }
 0x12a   : >> { %v825_v25 = vpop.f32.mrf.mxu1 }
 0x12b   : >> { %v985_v26 = vadd.f32 %v981_v23, %v975_v22  ;;  %v831_v27 = vadd.f32 %v825_v25, %v792_v24 }
 0x12d   : >> { %990 = vst.msk [vmem:[%s2130_s19 + $0x10] sm:$0xff] %vm472_vm0, %v985_v26  ;;  %v882_v29 = vadd.f32 %v876_v28, %v831_v27 }
 0x12f   : >> { %v937_v31 = vadd.f32 %v931_v30, %v882_v29 }
 0x131   : >> { %v976_v34 = vadd.f32 %v970_v32, %v937_v31  ;;  %541 = sbr.rel (!%p539_p12) target bundleno = 87 (0x57), region = 121 }
 0x133   : >> { %v986_v35 = vadd.f32 %v982_v33, %v976_v34 }
 0x135   : >> { %991 = vst.msk [vmem:[%s2130_s19 + $0x18] sm:$0xff] %vm472_vm0, %v986_v35 }
 0x13c   : > { %v995_v36 = vld [vmem:[#allocation2] sm:$0xff]  ;;  %v996_v39 = vld [vmem:[#allocation2 + $0x8] sm:$0xff]  ;;  %v997_v42 = vld [vmem:[#allocation2 + $0x10] sm:$0xff] }
 0x13d   : > { %v1063_v40 = vmul.f32 %v2150_v37, %v995_v36  ;;  %v1064_v41 = vmul.f32 %v2150_v37, %v996_v39  ;;  %v998_v43 = vld [vmem:[#allocation2 + $0x18] sm:$0xff]  ;;  %v999_v44 = vld [vmem:[#allocation2 + $0x20] sm:$0xff]  ;;  %v1065_v45 = vmul.f32 %v2150_v37, %v997_v42  ;;  %v1000_v48 = vld [vmem:[#allocation2 + $0x28] sm:$0xff] }
 0x13e   : > { %v1066_v46 = vmul.f32 %v2150_v37, %v998_v43  ;;  %v1067_v47 = vmul.f32 %v2150_v37, %v999_v44  ;;  %v1001_v49 = vld [vmem:[#allocation2 + $0x30] sm:$0xff]  ;;  %v1002_v50 = vld [vmem:[#allocation2 + $0x38] sm:$0xff]  ;;  %v1068_v53 = vmul.f32 %v2150_v37, %v1000_v48  ;;  %v1003_v59 = vld [vmem:[#allocation2 + $0x40] sm:$0xff] }
 0x13f   : > { %v1131_v51 = vadd.f32 %v2155_v38, %v1063_v40  ;;  %v1132_v52 = vadd.f32 %v2155_v38, %v1064_v41  ;;  %v1069_v54 = vmul.f32 %v2150_v37, %v1001_v49  ;;  %v1133_v55 = vadd.f32 %v2155_v38, %v1065_v45  ;;  %v1004_v60 = vld [vmem:[#allocation2 + $0x48] sm:$0xff]  ;;  %v1005_v1 = vld [vmem:[#allocation2 + $0x50] sm:$0xff]  ;;  %v1006_v2 = vld [vmem:[#allocation2 + $0x58] sm:$0xff] }
 0x140   : > { %v1134_v56 = vadd.f32 %v2155_v38, %v1066_v46  ;;  %v1135_v57 = vadd.f32 %v2155_v38, %v1067_v47  ;;  %v1070_v58 = vmul.f32 %v2150_v37, %v1002_v50  ;;  %v1136_v63 = vadd.f32 %v2155_v38, %v1068_v53  ;;  %v1007_v3 = vld [vmem:[#allocation2 + $0x60] sm:$0xff]  ;;  %v1008_v7 = vld [vmem:[#allocation2 + $0x68] sm:$0xff]  ;;  %v1009_v8 = vld [vmem:[#allocation2 + $0x70] sm:$0xff] }
 0x141   : > { %v1195_v61 = vpack.c.bf16 %v1131_v51, %v1131_v51  ;;  %v1196_v62 = vpack.c.bf16 %v1132_v52, %v1132_v52  ;;  %v1137_v0 = vadd.f32 %v2155_v38, %v1069_v54  ;;  %v1197_v4 = vpack.c.bf16 %v1133_v55, %v1133_v55  ;;  %v1010_v13 = vld [vmem:[#allocation2 + $0x78] sm:$0xff]  ;;  %v1011_v26 = vld [vmem:[#allocation2 + $0x80] sm:$0xff]  ;;  %v1012_v27 = vld [vmem:[#allocation2 + $0x88] sm:$0xff] }
 0x142   : > { %v1198_v5 = vpack.c.bf16 %v1134_v56, %v1134_v56  ;;  %v1138_v6 = vadd.f32 %v2155_v38, %v1070_v58  ;;  %v1199_v9 = vpack.c.bf16 %v1135_v57, %v1135_v57  ;;  %v1200_v10 = vpack.c.bf16 %v1136_v63, %v1136_v63  ;;  %v1013_v30 = vld [vmem:[#allocation2 + $0x90] sm:$0xff]  ;;  %v1014_v31 = vld [vmem:[#allocation2 + $0x98] sm:$0xff]  ;;  %v1015_v34 = vld [vmem:[#allocation2 + $0xa0] sm:$0xff] }
 0x143   : > { %1260 = vst.msk [vmem:[%s2027_s8] sm:$0xf] %vm1259_vm6, %v1195_v61  ;;  %v1071_v11 = vmul.f32 %v2150_v37, %v1003_v59  ;;  %v1072_v12 = vmul.f32 %v2150_v37, %v1004_v60  ;;  %v1201_v14 = vpack.c.bf16 %v1137_v0, %v1137_v0  ;;  %v1073_v15 = vmul.f32 %v2150_v37, %v1005_v1  ;;  %v1016_v41 = vld [vmem:[#allocation2 + $0xa8] sm:$0xff]  ;;  %v1017_v46 = vld [vmem:[#allocation2 + $0xb0] sm:$0xff]  ;;  %v1018_v50 = vld [vmem:[#allocation2 + $0xb8] sm:$0xff] }
 0x144   : > { %1261 = vst.msk [vmem:[%s2027_s8 + $0x4] sm:$0xf] %vm1259_vm6, %v1196_v62  ;;  %v1074_v16 = vmul.f32 %v2150_v37, %v1006_v2  ;;  %v1075_v17 = vmul.f32 %v2150_v37, %v1007_v3  ;;  %v1076_v19 = vmul.f32 %v2150_v37, %v1008_v7  ;;  %v1077_v21 = vmul.f32 %v2150_v37, %v1009_v8  ;;  %v1019_v54 = vld [vmem:[#allocation2 + $0xc0] sm:$0xff]  ;;  %v1020_v58 = vld [vmem:[#allocation2 + $0xc8] sm:$0xff]  ;;  %v1021_v62 = vld [vmem:[#allocation2 + $0xd0] sm:$0xff] }
 0x145   : > { %1262 = vst.msk [vmem:[%s2027_s8 + $0x8] sm:$0xf] %vm1259_vm6, %v1197_v4  ;;  %v1139_v18 = vadd.f32 %v2155_v38, %v1071_v11  ;;  %v1140_v20 = vadd.f32 %v2155_v38, %v1072_v12  ;;  %v1202_v23 = vpack.c.bf16 %v1138_v6, %v1138_v6  ;;  %v1141_v24 = vadd.f32 %v2155_v38, %v1073_v15  ;;  %v1022_v2 = vld [vmem:[#allocation2 + $0xd8] sm:$0xff]  ;;  %v1023_v6 = vld [vmem:[#allocation2 + $0xe0] sm:$0xff] }
 0x146   : > { %1263 = vst.msk [vmem:[%s2027_s8 + $0xc] sm:$0xf] %vm1259_vm6, %v1198_v5  ;;  %v1142_v22 = vadd.f32 %v2155_v38, %v1074_v16  ;;  %v1078_v25 = vmul.f32 %v2150_v37, %v1010_v13  ;;  %v1143_v29 = vadd.f32 %v2155_v38, %v1075_v17  ;;  %v1144_v33 = vadd.f32 %v2155_v38, %v1076_v19 }
 0x147   : > { %1264 = vst.msk [vmem:[%s2027_s8 + $0x10] sm:$0xf] %vm1259_vm6, %v1199_v9  ;;  %v1203_v28 = vpack.c.bf16 %v1139_v18, %v1139_v18  ;;  %v1204_v32 = vpack.c.bf16 %v1140_v20, %v1140_v20  ;;  %v1205_v35 = vpack.c.bf16 %v1141_v24, %v1141_v24  ;;  %v1145_v36 = vadd.f32 %v2155_v38, %v1077_v21  ;;  %v1026_v18 = vld [vmem:[#allocation2 + $0xf8] sm:$0xff] }
 0x148   : > { %1265 = vst.msk [vmem:[%s2027_s8 + $0x14] sm:$0xf] %vm1259_vm6, %v1200_v10  ;;  %v1079_v39 = vmul.f32 %v2150_v37, %v1011_v26  ;;  %v1080_v40 = vmul.f32 %v2150_v37, %v1012_v27  ;;  %v1206_v42 = vpack.c.bf16 %v1142_v22, %v1142_v22  ;;  %v1146_v43 = vadd.f32 %v2155_v38, %v1078_v25  ;;  %v1024_v10 = vld [vmem:[#allocation2 + $0xe8] sm:$0xff] }
 0x149   : > { %1266 = vst.msk [vmem:[%s2027_s8 + $0x18] sm:$0xf] %vm1259_vm6, %v1201_v14  ;;  %v1081_v44 = vmul.f32 %v2150_v37, %v1013_v30  ;;  %v1082_v45 = vmul.f32 %v2150_v37, %v1014_v31  ;;  %v1207_v47 = vpack.c.bf16 %v1143_v29, %v1143_v29  ;;  %v1083_v49 = vmul.f32 %v2150_v37, %v1015_v34  ;;  %v1025_v14 = vld [vmem:[#allocation2 + $0xf0] sm:$0xff]  ;;  %v1028_v26 = vld [vmem:[#allocation2 + $0x108] sm:$0xff]  ;;  %v1030_v34 = vld [vmem:[#allocation2 + $0x118] sm:$0xff] }
 0x14a   : > { %1267 = vst.msk [vmem:[%s2027_s8 + $0x1c] sm:$0xf] %vm1259_vm6, %v1202_v23  ;;  %v1147_v48 = vadd.f32 %v2155_v38, %v1079_v39  ;;  %v1208_v51 = vpack.c.bf16 %v1144_v33, %v1144_v33  ;;  %v1148_v52 = vadd.f32 %v2155_v38, %v1080_v40  ;;  %v1084_v53 = vmul.f32 %v2150_v37, %v1016_v41  ;;  %v1027_v23 = vld [vmem:[#allocation2 + $0x100] sm:$0xff]  ;;  %v1029_v30 = vld [vmem:[#allocation2 + $0x110] sm:$0xff] }
 0x14b   : > { %1268 = vst.msk [vmem:[%s2027_s8 + $0x20] sm:$0xf] %vm1259_vm6, %v1203_v28  ;;  %v1209_v55 = vpack.c.bf16 %v1145_v36, %v1145_v36  ;;  %v1149_v56 = vadd.f32 %v2155_v38, %v1081_v44  ;;  %v1085_v57 = vmul.f32 %v2150_v37, %v1017_v46  ;;  %v1210_v59 = vpack.c.bf16 %v1146_v43, %v1146_v43  ;;  %v1031_v40 = vld [vmem:[#allocation2 + $0x120] sm:$0xff]  ;;  %v1032_v44 = vld [vmem:[#allocation2 + $0x128] sm:$0xff] }
 0x14c   : > { %1269 = vst.msk [vmem:[%s2027_s8 + $0x24] sm:$0xf] %vm1259_vm6, %v1204_v32  ;;  %v1150_v60 = vadd.f32 %v2155_v38, %v1082_v45  ;;  %v1086_v61 = vmul.f32 %v2150_v37, %v1018_v50  ;;  %v1211_v63 = vpack.c.bf16 %v1147_v48, %v1147_v48  ;;  %v1151_v0 = vadd.f32 %v2155_v38, %v1083_v49  ;;  %v1033_v48 = vld [vmem:[#allocation2 + $0x130] sm:$0xff] }
 0x14d   : > { %1270 = vst.msk [vmem:[%s2027_s8 + $0x28] sm:$0xf] %vm1259_vm6, %v1205_v35  ;;  %v1087_v1 = vmul.f32 %v2150_v37, %v1019_v54  ;;  %v1212_v3 = vpack.c.bf16 %v1148_v52, %v1148_v52  ;;  %v1152_v4 = vadd.f32 %v2155_v38, %v1084_v53  ;;  %v1088_v5 = vmul.f32 %v2150_v37, %v1020_v58  ;;  %v1034_v52 = vld [vmem:[#allocation2 + $0x138] sm:$0xff] }
 0x14e   : > { %1271 = vst.msk [vmem:[%s2027_s8 + $0x2c] sm:$0xf] %vm1259_vm6, %v1206_v42  ;;  %v1213_v7 = vpack.c.bf16 %v1149_v56, %v1149_v56  ;;  %v1153_v8 = vadd.f32 %v2155_v38, %v1085_v57  ;;  %v1089_v9 = vmul.f32 %v2150_v37, %v1021_v62  ;;  %v1214_v11 = vpack.c.bf16 %v1150_v60, %v1150_v60  ;;  %v1035_v56 = vld [vmem:[#allocation2 + $0x140] sm:$0xff]  ;;  %v1036_v60 = vld [vmem:[#allocation2 + $0x148] sm:$0xff] }
 0x14f   : > { %1272 = vst.msk [vmem:[%s2027_s8 + $0x30] sm:$0xf] %vm1259_vm6, %v1207_v47  ;;  %v1154_v12 = vadd.f32 %v2155_v38, %v1086_v61  ;;  %v1090_v13 = vmul.f32 %v2150_v37, %v1022_v2  ;;  %v1215_v15 = vpack.c.bf16 %v1151_v0, %v1151_v0  ;;  %v1155_v16 = vadd.f32 %v2155_v38, %v1087_v1  ;;  %v1037_v0 = vld [vmem:[#allocation2 + $0x150] sm:$0xff] }
 0x150   : > { %1273 = vst.msk [vmem:[%s2027_s8 + $0x34] sm:$0xf] %vm1259_vm6, %v1208_v51  ;;  %v1091_v17 = vmul.f32 %v2150_v37, %v1023_v6  ;;  %v1216_v20 = vpack.c.bf16 %v1152_v4, %v1152_v4  ;;  %v1156_v19 = vadd.f32 %v2155_v38, %v1088_v5  ;;  %v1092_v21 = vmul.f32 %v2150_v37, %v1024_v10  ;;  %v1038_v4 = vld [vmem:[#allocation2 + $0x158] sm:$0xff] }
 0x151   : > { %1274 = vst.msk [vmem:[%s2027_s8 + $0x38] sm:$0xf] %vm1259_vm6, %v1209_v55  ;;  %v1217_v24 = vpack.c.bf16 %v1153_v8, %v1153_v8  ;;  %v1157_v22 = vadd.f32 %v2155_v38, %v1089_v9  ;;  %v1093_v25 = vmul.f32 %v2150_v37, %v1025_v14  ;;  %v1218_v27 = vpack.c.bf16 %v1154_v12, %v1154_v12  ;;  %v1039_v8 = vld [vmem:[#allocation2 + $0x160] sm:$0xff]  ;;  %v1040_v12 = vld [vmem:[#allocation2 + $0x168] sm:$0xff] }
 0x152   : > { %1275 = vst.msk [vmem:[%s2027_s8 + $0x3c] sm:$0xf] %vm1259_vm6, %v1210_v59  ;;  %v1158_v28 = vadd.f32 %v2155_v38, %v1090_v13  ;;  %v1094_v29 = vmul.f32 %v2150_v37, %v1026_v18  ;;  %v1219_v31 = vpack.c.bf16 %v1155_v16, %v1155_v16  ;;  %v1159_v32 = vadd.f32 %v2155_v38, %v1091_v17  ;;  %v1041_v16 = vld [vmem:[#allocation2 + $0x170] sm:$0xff] }
 0x153   : > { %1276 = vst.msk [vmem:[%s2027_s8 + $0x40] sm:$0xf] %vm1259_vm6, %v1211_v63  ;;  %v1095_v33 = vmul.f32 %v2150_v37, %v1027_v23  ;;  %v1220_v35 = vpack.c.bf16 %v1156_v19, %v1156_v19  ;;  %v1160_v36 = vadd.f32 %v2155_v38, %v1092_v21  ;;  %v1096_v39 = vmul.f32 %v2150_v37, %v1028_v26  ;;  %v1042_v19 = vld [vmem:[#allocation2 + $0x178] sm:$0xff] }
 0x154   : > { %1277 = vst.msk [vmem:[%s2027_s8 + $0x44] sm:$0xf] %vm1259_vm6, %v1212_v3  ;;  %v1221_v41 = vpack.c.bf16 %v1157_v22, %v1157_v22  ;;  %v1161_v42 = vadd.f32 %v2155_v38, %v1093_v25  ;;  %v1097_v43 = vmul.f32 %v2150_v37, %v1029_v30  ;;  %v1222_v45 = vpack.c.bf16 %v1158_v28, %v1158_v28  ;;  %v1043_v22 = vld [vmem:[#allocation2 + $0x180] sm:$0xff]  ;;  %v1044_v28 = vld [vmem:[#allocation2 + $0x188] sm:$0xff] }
 0x155   : > { %1278 = vst.msk [vmem:[%s2027_s8 + $0x48] sm:$0xf] %vm1259_vm6, %v1213_v7  ;;  %v1162_v46 = vadd.f32 %v2155_v38, %v1094_v29  ;;  %v1098_v47 = vmul.f32 %v2150_v37, %v1030_v34  ;;  %v1223_v49 = vpack.c.bf16 %v1159_v32, %v1159_v32  ;;  %v1163_v50 = vadd.f32 %v2155_v38, %v1095_v33  ;;  %v1045_v32 = vld [vmem:[#allocation2 + $0x190] sm:$0xff] }
 0x156   : > { %1279 = vst.msk [vmem:[%s2027_s8 + $0x4c] sm:$0xf] %vm1259_vm6, %v1214_v11  ;;  %v1099_v51 = vmul.f32 %v2150_v37, %v1031_v40  ;;  %v1224_v53 = vpack.c.bf16 %v1160_v36, %v1160_v36  ;;  %v1164_v54 = vadd.f32 %v2155_v38, %v1096_v39  ;;  %v1100_v55 = vmul.f32 %v2150_v37, %v1032_v44  ;;  %v1046_v36 = vld [vmem:[#allocation2 + $0x198] sm:$0xff] }
 0x157   : > { %1280 = vst.msk [vmem:[%s2027_s8 + $0x50] sm:$0xf] %vm1259_vm6, %v1215_v15  ;;  %v1225_v57 = vpack.c.bf16 %v1161_v42, %v1161_v42  ;;  %v1165_v58 = vadd.f32 %v2155_v38, %v1097_v43  ;;  %v1101_v59 = vmul.f32 %v2150_v37, %v1033_v48  ;;  %v1226_v61 = vpack.c.bf16 %v1162_v46, %v1162_v46  ;;  %v1058_v39 = vld [vmem:[#allocation2 + $0x1f8] sm:$0xff]  ;;  %v1047_v43 = vld [vmem:[#allocation2 + $0x1a0] sm:$0xff] }
 0x158   : > { %1281 = vst.msk [vmem:[%s2027_s8 + $0x54] sm:$0xf] %vm1259_vm6, %v1216_v20  ;;  %v1166_v62 = vadd.f32 %v2155_v38, %v1098_v47  ;;  %v1102_v63 = vmul.f32 %v2150_v37, %v1034_v52  ;;  %v1227_v1 = vpack.c.bf16 %v1163_v50, %v1163_v50  ;;  %v1167_v2 = vadd.f32 %v2155_v38, %v1099_v51  ;;  %v1048_v47 = vld [vmem:[#allocation2 + $0x1a8] sm:$0xff]  ;;  %v1049_v51 = vld [vmem:[#allocation2 + $0x1b0] sm:$0xff] }
 0x159   : > { %1282 = vst.msk [vmem:[%s2027_s8 + $0x58] sm:$0xf] %vm1259_vm6, %v1217_v24  ;;  %v1103_v3 = vmul.f32 %v2150_v37, %v1035_v56  ;;  %v1228_v5 = vpack.c.bf16 %v1164_v54, %v1164_v54  ;;  %v1168_v6 = vadd.f32 %v2155_v38, %v1100_v55  ;;  %v1104_v7 = vmul.f32 %v2150_v37, %v1036_v60  ;;  %v1050_v56 = vld [vmem:[#allocation2 + $0x1b8] sm:$0xff]  ;;  %v1051_v60 = vld [vmem:[#allocation2 + $0x1c0] sm:$0xff] }
 0x15a   : > { %1283 = vst.msk [vmem:[%s2027_s8 + $0x5c] sm:$0xf] %vm1259_vm6, %v1218_v27  ;;  %v1229_v9 = vpack.c.bf16 %v1165_v58, %v1165_v58  ;;  %v1169_v10 = vadd.f32 %v2155_v38, %v1101_v59  ;;  %v1105_v11 = vmul.f32 %v2150_v37, %v1037_v0  ;;  %v1230_v13 = vpack.c.bf16 %v1166_v62, %v1166_v62 }
 0x15b   : > { %1284 = vst.msk [vmem:[%s2027_s8 + $0x60] sm:$0xf] %vm1259_vm6, %v1219_v31  ;;  %v1170_v14 = vadd.f32 %v2155_v38, %v1102_v63  ;;  %v1106_v15 = vmul.f32 %v2150_v37, %v1038_v4  ;;  %v1231_v17 = vpack.c.bf16 %v1167_v2, %v1167_v2  ;;  %v1171_v18 = vadd.f32 %v2155_v38, %v1103_v3 }
 0x15c   : > { %1285 = vst.msk [vmem:[%s2027_s8 + $0x64] sm:$0xf] %vm1259_vm6, %v1220_v35  ;;  %v1107_v20 = vmul.f32 %v2150_v37, %v1039_v8  ;;  %v1232_v21 = vpack.c.bf16 %v1168_v6, %v1168_v6  ;;  %v1172_v23 = vadd.f32 %v2155_v38, %v1104_v7  ;;  %v1108_v24 = vmul.f32 %v2150_v37, %v1040_v12 }
 0x15d   : > { %1286 = vst.msk [vmem:[%s2027_s8 + $0x68] sm:$0xf] %vm1259_vm6, %v1221_v41  ;;  %v1233_v25 = vpack.c.bf16 %v1169_v10, %v1169_v10  ;;  %v1173_v26 = vadd.f32 %v2155_v38, %v1105_v11  ;;  %v1109_v27 = vmul.f32 %v2150_v37, %v1041_v16  ;;  %v1234_v29 = vpack.c.bf16 %v1170_v14, %v1170_v14 }
 0x15e   : > { %1287 = vst.msk [vmem:[%s2027_s8 + $0x6c] sm:$0xf] %vm1259_vm6, %v1222_v45  ;;  %v1174_v30 = vadd.f32 %v2155_v38, %v1106_v15  ;;  %v1110_v31 = vmul.f32 %v2150_v37, %v1042_v19  ;;  %v1235_v33 = vpack.c.bf16 %v1171_v18, %v1171_v18  ;;  %v1175_v34 = vadd.f32 %v2155_v38, %v1107_v20 }
 0x15f   : > { %1288 = vst.msk [vmem:[%s2027_s8 + $0x70] sm:$0xf] %vm1259_vm6, %v1223_v49  ;;  %v1111_v35 = vmul.f32 %v2150_v37, %v1043_v22  ;;  %v1236_v40 = vpack.c.bf16 %v1172_v23, %v1172_v23  ;;  %v1176_v41 = vadd.f32 %v2155_v38, %v1108_v24  ;;  %v1112_v42 = vmul.f32 %v2150_v37, %v1044_v28 }
 0x160   : > { %1289 = vst.msk [vmem:[%s2027_s8 + $0x74] sm:$0xf] %vm1259_vm6, %v1224_v53  ;;  %v1237_v44 = vpack.c.bf16 %v1173_v26, %v1173_v26  ;;  %v1177_v45 = vadd.f32 %v2155_v38, %v1109_v27  ;;  %v1113_v46 = vmul.f32 %v2150_v37, %v1045_v32  ;;  %v1238_v48 = vpack.c.bf16 %v1174_v30, %v1174_v30 }
 0x161   : > { %1290 = vst.msk [vmem:[%s2027_s8 + $0x78] sm:$0xf] %vm1259_vm6, %v1225_v57  ;;  %v1178_v49 = vadd.f32 %v2155_v38, %v1110_v31  ;;  %v1114_v50 = vmul.f32 %v2150_v37, %v1046_v36  ;;  %v1126_v52 = vmul.f32 %v2150_v37, %v1058_v39  ;;  %v1239_v53 = vpack.c.bf16 %v1175_v34, %v1175_v34 }
 0x162   : > { %1291 = vst.msk [vmem:[%s2027_s8 + $0x7c] sm:$0xf] %vm1259_vm6, %v1226_v61  ;;  %v1179_v54 = vadd.f32 %v2155_v38, %v1111_v35  ;;  %v1115_v55 = vmul.f32 %v2150_v37, %v1047_v43  ;;  %v1240_v57 = vpack.c.bf16 %v1176_v41, %v1176_v41  ;;  %v1180_v58 = vadd.f32 %v2155_v38, %v1112_v42 }
 0x163   : > { %1292 = vst.msk [vmem:[%s2027_s8 + $0x80] sm:$0xf] %vm1259_vm6, %v1227_v1  ;;  %v1116_v59 = vmul.f32 %v2150_v37, %v1048_v47  ;;  %v2347_v61 = vadd.f32 %v2155_v38, %v1126_v52  ;;  %v1241_v62 = vpack.c.bf16 %v1177_v45, %v1177_v45  ;;  %v1181_v63 = vadd.f32 %v2155_v38, %v1113_v46  ;;  %v1052_v1 = vld [vmem:[#allocation2 + $0x1c8] sm:$0xff] }
 0x164   : > { %1293 = vst.msk [vmem:[%s2027_s8 + $0x84] sm:$0xf] %vm1259_vm6, %v1228_v5  ;;  %v1117_v0 = vmul.f32 %v2150_v37, %v1049_v51  ;;  %v1242_v2 = vpack.c.bf16 %v1178_v49, %v1178_v49  ;;  %v1182_v3 = vadd.f32 %v2155_v38, %v1114_v50  ;;  %v1118_v4 = vmul.f32 %v2150_v37, %v1050_v56  ;;  %v1053_v5 = vld [vmem:[#allocation2 + $0x1d0] sm:$0xff] }
 0x165   : > { %1294 = vst.msk [vmem:[%s2027_s8 + $0x88] sm:$0xf] %vm1259_vm6, %v1229_v9  ;;  %v1243_v6 = vpack.c.bf16 %v1179_v54, %v1179_v54  ;;  %v1183_v7 = vadd.f32 %v2155_v38, %v1115_v55  ;;  %v1119_v8 = vmul.f32 %v2150_v37, %v1051_v60  ;;  %v1054_v9 = vld [vmem:[#allocation2 + $0x1d8] sm:$0xff]  ;;  %v1244_v10 = vpack.c.bf16 %v1180_v58, %v1180_v58 }
 0x166   : > { %1295 = vst.msk [vmem:[%s2027_s8 + $0x8c] sm:$0xf] %vm1259_vm6, %v1230_v13  ;;  %v1184_v11 = vadd.f32 %v2155_v38, %v1116_v59  ;;  %v1120_v12 = vmul.f32 %v2150_v37, %v1052_v1  ;;  %v1055_v13 = vld [vmem:[#allocation2 + $0x1e0] sm:$0xff]  ;;  %v1245_v14 = vpack.c.bf16 %v1181_v63, %v1181_v63  ;;  %v1185_v15 = vadd.f32 %v2155_v38, %v1117_v0 }
 0x167   : > { %1296 = vst.msk [vmem:[%s2027_s8 + $0x90] sm:$0xf] %vm1259_vm6, %v1231_v17  ;;  %v1121_v16 = vmul.f32 %v2150_v37, %v1053_v5  ;;  %v1056_v17 = vld [vmem:[#allocation2 + $0x1e8] sm:$0xff]  ;;  %v1246_v18 = vpack.c.bf16 %v1182_v3, %v1182_v3  ;;  %v1186_v20 = vadd.f32 %v2155_v38, %v1118_v4  ;;  %v1122_v19 = vmul.f32 %v2150_v37, %v1054_v9 }
 0x168   : > { %1297 = vst.msk [vmem:[%s2027_s8 + $0x94] sm:$0xf] %vm1259_vm6, %v1232_v21  ;;  %v1057_v21 = vld [vmem:[#allocation2 + $0x1f0] sm:$0xff]  ;;  %v1247_v23 = vpack.c.bf16 %v1183_v7, %v1183_v7  ;;  %v1187_v24 = vadd.f32 %v2155_v38, %v1119_v8  ;;  %v1123_v22 = vmul.f32 %v2150_v37, %v1055_v13  ;;  %v1188_v26 = vadd.f32 %v2155_v38, %v1120_v12 }
 0x169   : > { %1298 = vst.msk [vmem:[%s2027_s8 + $0x98] sm:$0xf] %vm1259_vm6, %v1233_v25  ;;  %v1248_v25 = vpack.c.bf16 %v1184_v11, %v1184_v11  ;;  %v1124_v27 = vmul.f32 %v2150_v37, %v1056_v17  ;;  %v1249_v28 = vpack.c.bf16 %v1185_v15, %v1185_v15  ;;  %v1125_v30 = vmul.f32 %v2150_v37, %v1057_v21 }
 0x16a   : > { %1299 = vst.msk [vmem:[%s2027_s8 + $0x9c] sm:$0xf] %vm1259_vm6, %v1234_v29  ;;  %v1189_v29 = vadd.f32 %v2155_v38, %v1121_v16  ;;  %v1250_v31 = vpack.c.bf16 %v1186_v20, %v1186_v20  ;;  %v1190_v32 = vadd.f32 %v2155_v38, %v1122_v19  ;;  %v1191_v34 = vadd.f32 %v2155_v38, %v1123_v22 }
 0x16b   : > { %1300 = vst.msk [vmem:[%s2027_s8 + $0xa0] sm:$0xf] %vm1259_vm6, %v1235_v33  ;;  %v1251_v33 = vpack.c.bf16 %v1187_v24, %v1187_v24  ;;  %v1252_v35 = vpack.c.bf16 %v1188_v26, %v1188_v26  ;;  %v1192_v37 = vadd.f32 %v2155_v38, %v1124_v27  ;;  %v1193_v39 = vadd.f32 %v2155_v38, %v1125_v30 }
 0x16c   : > { %1301 = vst.msk [vmem:[%s2027_s8 + $0xa4] sm:$0xf] %vm1259_vm6, %v1236_v40  ;;  %v1253_v36 = vpack.c.bf16 %v1189_v29, %v1189_v29  ;;  %v1254_v40 = vpack.c.bf16 %v1190_v32, %v1190_v32  ;;  %v1255_v41 = vpack.c.bf16 %v1191_v34, %v1191_v34  ;;  %v1258_v43 = vpack.c.bf16 %v2347_v61, %v2347_v61 }
 0x16d   : > { %1302 = vst.msk [vmem:[%s2027_s8 + $0xa8] sm:$0xf] %vm1259_vm6, %v1237_v44  ;;  %v1256_v42 = vpack.c.bf16 %v1192_v37, %v1192_v37  ;;  %v1257_v38 = vpack.c.bf16 %v1193_v39, %v1193_v39 }
 0x16e   : > { %1303 = vst.msk [vmem:[%s2027_s8 + $0xac] sm:$0xf] %vm1259_vm6, %v1238_v48 }
 0x16f   : > { %1304 = vst.msk [vmem:[%s2027_s8 + $0xb0] sm:$0xf] %vm1259_vm6, %v1239_v53 }
 0x170   : > { %1305 = vst.msk [vmem:[%s2027_s8 + $0xb4] sm:$0xf] %vm1259_vm6, %v1240_v57 }
 0x171   : > { %1306 = vst.msk [vmem:[%s2027_s8 + $0xb8] sm:$0xf] %vm1259_vm6, %v1241_v62 }
 0x172   : > { %1307 = vst.msk [vmem:[%s2027_s8 + $0xbc] sm:$0xf] %vm1259_vm6, %v1242_v2 }
 0x173   : > { %1308 = vst.msk [vmem:[%s2027_s8 + $0xc0] sm:$0xf] %vm1259_vm6, %v1243_v6 }
 0x174   : > { %1309 = vst.msk [vmem:[%s2027_s8 + $0xc4] sm:$0xf] %vm1259_vm6, %v1244_v10 }
 0x175   : > { %1310 = vst.msk [vmem:[%s2027_s8 + $0xc8] sm:$0xf] %vm1259_vm6, %v1245_v14 }
 0x176   : > { %1311 = vst.msk [vmem:[%s2027_s8 + $0xcc] sm:$0xf] %vm1259_vm6, %v1246_v18 }
 0x177   : > { %1312 = vst.msk [vmem:[%s2027_s8 + $0xd0] sm:$0xf] %vm1259_vm6, %v1247_v23 }
 0x178   : > { %1313 = vst.msk [vmem:[%s2027_s8 + $0xd4] sm:$0xf] %vm1259_vm6, %v1248_v25 }
 0x179   : > { %1314 = vst.msk [vmem:[%s2027_s8 + $0xd8] sm:$0xf] %vm1259_vm6, %v1249_v28 }
 0x17a   : > { %1315 = vst.msk [vmem:[%s2027_s8 + $0xdc] sm:$0xf] %vm1259_vm6, %v1250_v31 }
 0x17b   : > { %1316 = vst.msk [vmem:[%s2027_s8 + $0xe0] sm:$0xf] %vm1259_vm6, %v1251_v33 }
 0x17c   : > { %1317 = vst.msk [vmem:[%s2027_s8 + $0xe4] sm:$0xf] %vm1259_vm6, %v1252_v35 }
 0x17d   : > { %1318 = vst.msk [vmem:[%s2027_s8 + $0xe8] sm:$0xf] %vm1259_vm6, %v1253_v36 }
 0x17e   : > { %1319 = vst.msk [vmem:[%s2027_s8 + $0xec] sm:$0xf] %vm1259_vm6, %v1254_v40 }
 0x17f   : > { %1320 = vst.msk [vmem:[%s2027_s8 + $0xf0] sm:$0xf] %vm1259_vm6, %v1255_v41 }
 0x180   : > { %1321 = vst.msk [vmem:[%s2027_s8 + $0xf4] sm:$0xf] %vm1259_vm6, %v1256_v42 }
 0x181   : > { %1322 = vst.msk [vmem:[%s2027_s8 + $0xf8] sm:$0xf] %vm1259_vm6, %v1257_v38 }
 0x182   : > { %1323 = vst.msk [vmem:[%s2027_s8 + $0xfc] sm:$0xf] %vm1259_vm6, %v1258_v43 }
 0x183   : > { %1723 = shalt.err (!%p1720_p6)
}
 0x184   : > { %s1786_s8 = smov 64   ;;  %s1787_s27 = smov 4  }
 0x185   : > { %1627 = dma.vmem_to_hbm [thread:$0]  (%p1863_p4), %s1342_s25, 4096, %s1344_s29, %s1325_s11, %s1786_s8, %s1786_s8, %s1787_s27  }
 0x186 PF: > { %p1633_p7 = scmp.ge.s32.totalorder %s1778_s26, 2  ;;  %s1358_s28 = sand.u32 1, %s1758_s21  }
 0x187   : > { %s1359_s15 = scalar_lea.sflag [#allocation4], %s1358_s28 }
 0x188   : > { %p1630_p9 = pnand %p1633_p7, %p1870_p8 }
 0x18a   : > { %p1631_p10 = pneg %p1630_p9 }
 0x18c   : > { %1753 = dma.done.wait (%p1631_p10), %s1359_s15, 4096  }
 0x18d   : > { %1755 = vsyncadd (%p1631_p10), %s1359_s15, 4294963200  ;;  %s19_s26 = sadd.s32 1, %s1778_s26   ;;  %s2477_s14 = sld [smem:[#allocation6_spill]] }
 0x18e   : > { %p16_p11 = scmp.ge.s32.totalorder %s19_s26, 4   ;;  %s2478_s23 = sld [smem:[#allocation9_spill]] }
 0x18f   : > { %s2479_s24 = sld [smem:[#allocation7_spill]]  ;;  %s2481_s21 = smov %s1762_s22 }
 0x190   : > { %s2480_s25 = sld [smem:[#allocation8_spill]]  ;;  %18 = sbr.rel (!%p16_p11) target bundleno = 4 (0x4), region = 132 }
 0x193   : > { %s2482_s22 = smov %s2477_s14 }
 0x195   :  { %1365 = vsyncpa [#allocation4], 1 }
 0x196   :  { %1367 = vsyncpa [#allocation4 + $0x1], 1 }

</bundles_post_ra>
